<compile_context>
chip_gen: v7x
topology: tpu7x:2x2x1
jax: 0.10.0
libtpu: 0.0.40
codegen_flags: <defaults>
</compile_context>

<pallas_src>
import functools

import jax
import jax.numpy as jnp
from jax import lax
from jax.experimental import pallas as pl
from jax.experimental.pallas import tpu as pltpu


def _mvnll_kernel(means_ref, targets_ref, L_ref, loss_ref, *, n, eps):
    """One batch tile of TB elements; batch is packed along the lane axis.

    Layouts (set up by the wrapper):
      means_ref, targets_ref : (N, TB)     value[k, b]    = means/targets[b, k]
      L_ref                  : (N, N, TB)  value[m, i, b] = L[b, i, m]
      loss_ref               : (1, TB)     per-element NLL (lane-dense store)
    """
    N = n
    f32 = jnp.float32
    TB = means_ref.shape[1]
    eps_f = jnp.asarray(eps, f32)
    tiny = jnp.asarray(1e-30, f32)

    # Sublane (feature) index column: used for triangular masks and the eps*I diagonal.
    k_iota = lax.broadcasted_iota(jnp.int32, (N, 1), 0)            # (N, 1)

    # diff[k, b] = targets[b, k] - means[b, k]
    diff = targets_ref[...] - means_ref[...]                        # (N, TB)

    # ---- cov[b] = L[b] @ L[b]^T + eps * I, lane-parallel over the TB batch lanes ----
    # cov[i, k, b] = sum_m L[b, i, m] * L[b, k, m]
    # Kept as a Python list of N (N, TB) "row pages": pure 2-D VPU work, no 3-D
    # reshapes, no MXU.
    lms = [L_ref[m] for m in range(N)]                              # each (N, TB)
    A = []
    for i in range(N):
        page = lms[0][i:i + 1, :] * lms[0]                          # (N, TB)
        for m in range(1, N):
            page = page + lms[m][i:i + 1, :] * lms[m]
        page = page + jnp.where(k_iota == i, eps_f, 0.0)            # + eps on the diagonal
        A.append(page)

    # ---- fused Cholesky + logdet + forward substitution (unrolled, N is small) ----
    #   cov = C C^T,   logdet(cov) = sum_j log(d_j),   quad = || C^{-1} diff ||^2
    r = diff                                                        # solve residual (N, TB)
    logdet = jnp.zeros((1, TB), f32)
    quad = jnp.zeros((1, TB), f32)
    for j in range(N):
        row_j = A[j]                                                # (N, TB); == column j (symmetry)
        d = jnp.maximum(row_j[j:j + 1, :], tiny)                    # (1, TB) clamped pivot
        inv_sqrt_d = lax.rsqrt(d)                                   # (1, TB), EUP
        c_j = jnp.where(k_iota >= j, row_j * inv_sqrt_d, 0.0)       # (N, TB) Cholesky column j
        logdet = logdet + jnp.log(d)
        # forward substitution: y_j = (diff_j - sum_{m<j} C[j,m] y_m) * (1/sqrt(d_j))
        y_j = r[j:j + 1, :] * inv_sqrt_d                            # (1, TB)
        quad = quad + y_j * y_j
        r = r - c_j * y_j
        # rank-1 trailing update; rows <= j are never read again.
        for i in range(j + 1, N):
            A[i] = A[i] - c_j[i:i + 1, :] * c_j

    loss_ref[...] = 0.5 * (logdet + quad)                           # (1, TB) lane-dense store


def gaussian_mv_nll(means, targets, L, eps=1e-6, tb=256):
    """mean_b 0.5*(logdet(L_b L_b^T + eps I) + diff_b^T (L_b L_b^T + eps I)^{-1} diff_b)."""
    B, N = means.shape
    assert targets.shape == (B, N) and L.shape == (B, N, N)
    f32 = jnp.float32
    means = means.astype(f32)
    targets = targets.astype(f32)
    L = L.astype(f32)

    # Batch-tile size: whole f32 lane groups (multiple of 128); keep moderate so the
    # unrolled Cholesky state stays within vregs (no spills).
    tb = max(128, min(int(tb), 1024))
    tb = (tb // 128) * 128
    b_pad = ((B + tb - 1) // tb) * tb
    pad = b_pad - B

    # Wrapper-side layout plumbing: batch on the (dense) lane axis.
    #   L_packed[m, i, b] = L[b, i, m];   means_t[k, b] = means[b, k]
    L_packed = jnp.transpose(L, (2, 1, 0))                          # (N, N, B)
    means_t = means.T                                               # (N, B)
    targets_t = targets.T                                           # (N, B)
    if pad:
        L_packed = jnp.pad(L_packed, ((0, 0), (0, 0), (0, pad)))    # padded lanes: cov = eps*I
        means_t = jnp.pad(means_t, ((0, 0), (0, pad)))
        targets_t = jnp.pad(targets_t, ((0, 0), (0, pad)))

    kernel = functools.partial(_mvnll_kernel, n=N, eps=float(eps))
    per_batch = pl.pallas_call(
        kernel,
        out_shape=jax.ShapeDtypeStruct((1, b_pad), f32),
        grid=(b_pad // tb,),
        in_specs=[
            pl.BlockSpec((N, tb), lambda t: (0, t)),                # means_t tile
            pl.BlockSpec((N, tb), lambda t: (0, t)),                # targets_t tile
            pl.BlockSpec((N, N, tb), lambda t: (0, 0, t)),          # L_packed tile
        ],
        out_specs=pl.BlockSpec((1, tb), lambda t: (0, t)),          # lane-dense loss tile
        compiler_params=pltpu.CompilerParams(
            dimension_semantics=("parallel",)),                     # batch tiles shard across TCs
    )(means_t, targets_t, L_packed)

    # Trivial glue reduction over the batch (matches torch.mean(loss)); drop padded lanes.
    return jnp.mean(per_batch[0, :B])


def _reference_nll(means, targets, L, eps=1e-6):
    """Pure-JAX reference mirroring the PyTorch module."""
    B, N = means.shape
    covs = L @ jnp.swapaxes(L, -1, -2) + eps * jnp.eye(N, dtype=means.dtype)
    diff = targets - means
    _, logdet = jnp.linalg.slogdet(covs)
    sol = jnp.linalg.solve(covs, diff[..., None])                   # (B, N, 1)
    quad = jnp.sum(diff * sol[..., 0], axis=-1)
    return jnp.mean(0.5 * (logdet + quad))


if __name__ == "__main__":
    B, N = 16, 8
    key = jax.random.PRNGKey(0)
    k1, k2, k3 = jax.random.split(key, 3)
    means = jax.random.normal(k1, (B, N), dtype=jnp.float32)
    targets = jax.random.normal(k2, (B, N), dtype=jnp.float32)
    # Well-conditioned factor (identity + modest noise) so the f32 Cholesky-based
    # kernel and the LU-based reference agree tightly; with a near-singular random
    # L the quad term amplifies f32 round-off regardless of algorithm.
    L = jnp.eye(N, dtype=jnp.float32) + 0.1 * jax.random.normal(k3, (B, N, N), dtype=jnp.float32)

    out = jax.block_until_ready(gaussian_mv_nll(means, targets, L))
    ref = jax.block_until_ready(_reference_nll(means, targets, L))
    assert jnp.allclose(out, ref, rtol=2e-3, atol=2e-3), (out, ref)

    print("KERNEL_OK")
</pallas_src>

<mosaic_0001>
module attributes {stable_mosaic.version = 11 : i64} {
  func.func @_mvnll_kernel(%arg0: i32, %arg1: memref<8x256xf32, #tpu.memory_space<vmem>>, %arg2: memref<8x256xf32, #tpu.memory_space<vmem>>, %arg3: memref<8x8x256xf32, #tpu.memory_space<vmem>>, %arg4: memref<1x256xf32, #tpu.memory_space<vmem>>) attributes {dimension_semantics = [#tpu.dimension_semantics<parallel>], iteration_bounds = array<i64: 1>, scalar_prefetch = 0 : i64, scratch_operands = 0 : i64, tpu.core_type = #tpu.core_type<tc>, window_params = [{transform_indices = @transform_0, window_bounds = array<i64: 8, 256>}, {transform_indices = @transform_1, window_bounds = array<i64: 8, 256>}, {transform_indices = @transform_2, window_bounds = array<i64: 8, 8, 256>}, {transform_indices = @transform_3, window_bounds = array<i64: 1, 256>}]} {
    %0 = tpu.iota {dimensions = array<i32: 0>} : vector<8x1xi32>
    %c0 = arith.constant 0 : index
    %c0_0 = arith.constant 0 : index
    %1 = vector.load %arg2[%c0, %c0_0] : memref<8x256xf32, #tpu.memory_space<vmem>>, vector<8x256xf32>
    %c0_1 = arith.constant 0 : index
    %c0_2 = arith.constant 0 : index
    %2 = vector.load %arg1[%c0_1, %c0_2] : memref<8x256xf32, #tpu.memory_space<vmem>>, vector<8x256xf32>
    %3 = arith.subf %1, %2 : vector<8x256xf32>
    %c0_3 = arith.constant 0 : index
    %c0_4 = arith.constant 0 : index
    %c0_5 = arith.constant 0 : index
    %4 = vector.load %arg3[%c0_3, %c0_4, %c0_5] : memref<8x8x256xf32, #tpu.memory_space<vmem>>, vector<1x8x256xf32>
    %5 = vector.shape_cast %4 : vector<1x8x256xf32> to vector<8x256xf32>
    %c1 = arith.constant 1 : index
    %c0_6 = arith.constant 0 : index
    %c0_7 = arith.constant 0 : index
    %6 = vector.load %arg3[%c1, %c0_6, %c0_7] : memref<8x8x256xf32, #tpu.memory_space<vmem>>, vector<1x8x256xf32>
    %7 = vector.shape_cast %6 : vector<1x8x256xf32> to vector<8x256xf32>
    %c2 = arith.constant 2 : index
    %c0_8 = arith.constant 0 : index
    %c0_9 = arith.constant 0 : index
    %8 = vector.load %arg3[%c2, %c0_8, %c0_9] : memref<8x8x256xf32, #tpu.memory_space<vmem>>, vector<1x8x256xf32>
    %9 = vector.shape_cast %8 : vector<1x8x256xf32> to vector<8x256xf32>
    %c3 = arith.constant 3 : index
    %c0_10 = arith.constant 0 : index
    %c0_11 = arith.constant 0 : index
    %10 = vector.load %arg3[%c3, %c0_10, %c0_11] : memref<8x8x256xf32, #tpu.memory_space<vmem>>, vector<1x8x256xf32>
    %11 = vector.shape_cast %10 : vector<1x8x256xf32> to vector<8x256xf32>
    %c4 = arith.constant 4 : index
    %c0_12 = arith.constant 0 : index
    %c0_13 = arith.constant 0 : index
    %12 = vector.load %arg3[%c4, %c0_12, %c0_13] : memref<8x8x256xf32, #tpu.memory_space<vmem>>, vector<1x8x256xf32>
    %13 = vector.shape_cast %12 : vector<1x8x256xf32> to vector<8x256xf32>
    %c5 = arith.constant 5 : index
    %c0_14 = arith.constant 0 : index
    %c0_15 = arith.constant 0 : index
    %14 = vector.load %arg3[%c5, %c0_14, %c0_15] : memref<8x8x256xf32, #tpu.memory_space<vmem>>, vector<1x8x256xf32>
    %15 = vector.shape_cast %14 : vector<1x8x256xf32> to vector<8x256xf32>
    %c6 = arith.constant 6 : index
    %c0_16 = arith.constant 0 : index
    %c0_17 = arith.constant 0 : index
    %16 = vector.load %arg3[%c6, %c0_16, %c0_17] : memref<8x8x256xf32, #tpu.memory_space<vmem>>, vector<1x8x256xf32>
    %17 = vector.shape_cast %16 : vector<1x8x256xf32> to vector<8x256xf32>
    %c7 = arith.constant 7 : index
    %c0_18 = arith.constant 0 : index
    %c0_19 = arith.constant 0 : index
    %18 = vector.load %arg3[%c7, %c0_18, %c0_19] : memref<8x8x256xf32, #tpu.memory_space<vmem>>, vector<1x8x256xf32>
    %19 = vector.shape_cast %18 : vector<1x8x256xf32> to vector<8x256xf32>
    %20 = vector.extract_strided_slice %5 {offsets = [0, 0], sizes = [1, 256], strides = [1, 1]} : vector<8x256xf32> to vector<1x256xf32>
    %21 = vector.broadcast %20 : vector<1x256xf32> to vector<8x256xf32>
    %22 = arith.mulf %21, %5 : vector<8x256xf32>
    %23 = vector.extract_strided_slice %7 {offsets = [0, 0], sizes = [1, 256], strides = [1, 1]} : vector<8x256xf32> to vector<1x256xf32>
    %24 = vector.broadcast %23 : vector<1x256xf32> to vector<8x256xf32>
    %25 = arith.mulf %24, %7 : vector<8x256xf32>
    %26 = arith.addf %22, %25 : vector<8x256xf32>
    %27 = vector.extract_strided_slice %9 {offsets = [0, 0], sizes = [1, 256], strides = [1, 1]} : vector<8x256xf32> to vector<1x256xf32>
    %28 = vector.broadcast %27 : vector<1x256xf32> to vector<8x256xf32>
    %29 = arith.mulf %28, %9 : vector<8x256xf32>
    %30 = arith.addf %26, %29 : vector<8x256xf32>
    %31 = vector.extract_strided_slice %11 {offsets = [0, 0], sizes = [1, 256], strides = [1, 1]} : vector<8x256xf32> to vector<1x256xf32>
    %32 = vector.broadcast %31 : vector<1x256xf32> to vector<8x256xf32>
    %33 = arith.mulf %32, %11 : vector<8x256xf32>
    %34 = arith.addf %30, %33 : vector<8x256xf32>
    %35 = vector.extract_strided_slice %13 {offsets = [0, 0], sizes = [1, 256], strides = [1, 1]} : vector<8x256xf32> to vector<1x256xf32>
    %36 = vector.broadcast %35 : vector<1x256xf32> to vector<8x256xf32>
    %37 = arith.mulf %36, %13 : vector<8x256xf32>
    %38 = arith.addf %34, %37 : vector<8x256xf32>
    %39 = vector.extract_strided_slice %15 {offsets = [0, 0], sizes = [1, 256], strides = [1, 1]} : vector<8x256xf32> to vector<1x256xf32>
    %40 = vector.broadcast %39 : vector<1x256xf32> to vector<8x256xf32>
    %41 = arith.mulf %40, %15 : vector<8x256xf32>
    %42 = arith.addf %38, %41 : vector<8x256xf32>
    %43 = vector.extract_strided_slice %17 {offsets = [0, 0], sizes = [1, 256], strides = [1, 1]} : vector<8x256xf32> to vector<1x256xf32>
    %44 = vector.broadcast %43 : vector<1x256xf32> to vector<8x256xf32>
    %45 = arith.mulf %44, %17 : vector<8x256xf32>
    %46 = arith.addf %42, %45 : vector<8x256xf32>
    %47 = vector.extract_strided_slice %19 {offsets = [0, 0], sizes = [1, 256], strides = [1, 1]} : vector<8x256xf32> to vector<1x256xf32>
    %48 = vector.broadcast %47 : vector<1x256xf32> to vector<8x256xf32>
    %49 = arith.mulf %48, %19 : vector<8x256xf32>
    %50 = arith.addf %46, %49 : vector<8x256xf32>
    %c0_i32 = arith.constant 0 : i32
    %51 = vector.broadcast %c0_i32 : i32 to vector<8x1xi32>
    %52 = arith.cmpi eq, %0, %51 : vector<8x1xi32>
    %cst = arith.constant 9.99999997E-7 : f32
    %cst_20 = arith.constant 0.000000e+00 : f32
    %53 = vector.broadcast %cst : f32 to vector<8x1xf32>
    %54 = vector.broadcast %cst_20 : f32 to vector<8x1xf32>
    %55 = arith.select %52, %53, %54 : vector<8x1xi1>, vector<8x1xf32>
    %56 = vector.broadcast %55 : vector<8x1xf32> to vector<8x256xf32>
    %57 = arith.addf %50, %56 : vector<8x256xf32>
    %58 = vector.extract_strided_slice %5 {offsets = [1, 0], sizes = [1, 256], strides = [1, 1]} : vector<8x256xf32> to vector<1x256xf32>
    %59 = vector.broadcast %58 : vector<1x256xf32> to vector<8x256xf32>
    %60 = arith.mulf %59, %5 : vector<8x256xf32>
    %61 = vector.extract_strided_slice %7 {offsets = [1, 0], sizes = [1, 256], strides = [1, 1]} : vector<8x256xf32> to vector<1x256xf32>
    %62 = vector.broadcast %61 : vector<1x256xf32> to vector<8x256xf32>
    %63 = arith.mulf %62, %7 : vector<8x256xf32>
    %64 = arith.addf %60, %63 : vector<8x256xf32>
    %65 = vector.extract_strided_slice %9 {offsets = [1, 0], sizes = [1, 256], strides = [1, 1]} : vector<8x256xf32> to vector<1x256xf32>
    %66 = vector.broadcast %65 : vector<1x256xf32> to vector<8x256xf32>
    %67 = arith.mulf %66, %9 : vector<8x256xf32>
    %68 = arith.addf %64, %67 : vector<8x256xf32>
    %69 = vector.extract_strided_slice %11 {offsets = [1, 0], sizes = [1, 256], strides = [1, 1]} : vector<8x256xf32> to vector<1x256xf32>
    %70 = vector.broadcast %69 : vector<1x256xf32> to vector<8x256xf32>
    %71 = arith.mulf %70, %11 : vector<8x256xf32>
    %72 = arith.addf %68, %71 : vector<8x256xf32>
    %73 = vector.extract_strided_slice %13 {offsets = [1, 0], sizes = [1, 256], strides = [1, 1]} : vector<8x256xf32> to vector<1x256xf32>
    %74 = vector.broadcast %73 : vector<1x256xf32> to vector<8x256xf32>
    %75 = arith.mulf %74, %13 : vector<8x256xf32>
    %76 = arith.addf %72, %75 : vector<8x256xf32>
    %77 = vector.extract_strided_slice %15 {offsets = [1, 0], sizes = [1, 256], strides = [1, 1]} : vector<8x256xf32> to vector<1x256xf32>
    %78 = vector.broadcast %77 : vector<1x256xf32> to vector<8x256xf32>
    %79 = arith.mulf %78, %15 : vector<8x256xf32>
    %80 = arith.addf %76, %79 : vector<8x256xf32>
    %81 = vector.extract_strided_slice %17 {offsets = [1, 0], sizes = [1, 256], strides = [1, 1]} : vector<8x256xf32> to vector<1x256xf32>
    %82 = vector.broadcast %81 : vector<1x256xf32> to vector<8x256xf32>
    %83 = arith.mulf %82, %17 : vector<8x256xf32>
    %84 = arith.addf %80, %83 : vector<8x256xf32>
    %85 = vector.extract_strided_slice %19 {offsets = [1, 0], sizes = [1, 256], strides = [1, 1]} : vector<8x256xf32> to vector<1x256xf32>
    %86 = vector.broadcast %85 : vector<1x256xf32> to vector<8x256xf32>
    %87 = arith.mulf %86, %19 : vector<8x256xf32>
    %88 = arith.addf %84, %87 : vector<8x256xf32>
    %c1_i32 = arith.constant 1 : i32
    %89 = vector.broadcast %c1_i32 : i32 to vector<8x1xi32>
    %90 = arith.cmpi eq, %0, %89 : vector<8x1xi32>
    %cst_21 = arith.constant 9.99999997E-7 : f32
    %cst_22 = arith.constant 0.000000e+00 : f32
    %91 = vector.broadcast %cst_21 : f32 to vector<8x1xf32>
    %92 = vector.broadcast %cst_22 : f32 to vector<8x1xf32>
    %93 = arith.select %90, %91, %92 : vector<8x1xi1>, vector<8x1xf32>
    %94 = vector.broadcast %93 : vector<8x1xf32> to vector<8x256xf32>
    %95 = arith.addf %88, %94 : vector<8x256xf32>
    %96 = vector.extract_strided_slice %5 {offsets = [2, 0], sizes = [1, 256], strides = [1, 1]} : vector<8x256xf32> to vector<1x256xf32>
    %97 = vector.broadcast %96 : vector<1x256xf32> to vector<8x256xf32>
    %98 = arith.mulf %97, %5 : vector<8x256xf32>
    %99 = vector.extract_strided_slice %7 {offsets = [2, 0], sizes = [1, 256], strides = [1, 1]} : vector<8x256xf32> to vector<1x256xf32>
    %100 = vector.broadcast %99 : vector<1x256xf32> to vector<8x256xf32>
    %101 = arith.mulf %100, %7 : vector<8x256xf32>
    %102 = arith.addf %98, %101 : vector<8x256xf32>
    %103 = vector.extract_strided_slice %9 {offsets = [2, 0], sizes = [1, 256], strides = [1, 1]} : vector<8x256xf32> to vector<1x256xf32>
    %104 = vector.broadcast %103 : vector<1x256xf32> to vector<8x256xf32>
    %105 = arith.mulf %104, %9 : vector<8x256xf32>
    %106 = arith.addf %102, %105 : vector<8x256xf32>
    %107 = vector.extract_strided_slice %11 {offsets = [2, 0], sizes = [1, 256], strides = [1, 1]} : vector<8x256xf32> to vector<1x256xf32>
    %108 = vector.broadcast %107 : vector<1x256xf32> to vector<8x256xf32>
    %109 = arith.mulf %108, %11 : vector<8x256xf32>
    %110 = arith.addf %106, %109 : vector<8x256xf32>
    %111 = vector.extract_strided_slice %13 {offsets = [2, 0], sizes = [1, 256], strides = [1, 1]} : vector<8x256xf32> to vector<1x256xf32>
    %112 = vector.broadcast %111 : vector<1x256xf32> to vector<8x256xf32>
    %113 = arith.mulf %112, %13 : vector<8x256xf32>
    %114 = arith.addf %110, %113 : vector<8x256xf32>
    %115 = vector.extract_strided_slice %15 {offsets = [2, 0], sizes = [1, 256], strides = [1, 1]} : vector<8x256xf32> to vector<1x256xf32>
    %116 = vector.broadcast %115 : vector<1x256xf32> to vector<8x256xf32>
    %117 = arith.mulf %116, %15 : vector<8x256xf32>
    %118 = arith.addf %114, %117 : vector<8x256xf32>
    %119 = vector.extract_strided_slice %17 {offsets = [2, 0], sizes = [1, 256], strides = [1, 1]} : vector<8x256xf32> to vector<1x256xf32>
    %120 = vector.broadcast %119 : vector<1x256xf32> to vector<8x256xf32>
    %121 = arith.mulf %120, %17 : vector<8x256xf32>
    %122 = arith.addf %118, %121 : vector<8x256xf32>
    %123 = vector.extract_strided_slice %19 {offsets = [2, 0], sizes = [1, 256], strides = [1, 1]} : vector<8x256xf32> to vector<1x256xf32>
    %124 = vector.broadcast %123 : vector<1x256xf32> to vector<8x256xf32>
    %125 = arith.mulf %124, %19 : vector<8x256xf32>
    %126 = arith.addf %122, %125 : vector<8x256xf32>
    %c2_i32 = arith.constant 2 : i32
    %127 = vector.broadcast %c2_i32 : i32 to vector<8x1xi32>
    %128 = arith.cmpi eq, %0, %127 : vector<8x1xi32>
    %cst_23 = arith.constant 9.99999997E-7 : f32
    %cst_24 = arith.constant 0.000000e+00 : f32
    %129 = vector.broadcast %cst_23 : f32 to vector<8x1xf32>
    %130 = vector.broadcast %cst_24 : f32 to vector<8x1xf32>
    %131 = arith.select %128, %129, %130 : vector<8x1xi1>, vector<8x1xf32>
    %132 = vector.broadcast %131 : vector<8x1xf32> to vector<8x256xf32>
    %133 = arith.addf %126, %132 : vector<8x256xf32>
    %134 = vector.extract_strided_slice %5 {offsets = [3, 0], sizes = [1, 256], strides = [1, 1]} : vector<8x256xf32> to vector<1x256xf32>
    %135 = vector.broadcast %134 : vector<1x256xf32> to vector<8x256xf32>
    %136 = arith.mulf %135, %5 : vector<8x256xf32>
    %137 = vector.extract_strided_slice %7 {offsets = [3, 0], sizes = [1, 256], strides = [1, 1]} : vector<8x256xf32> to vector<1x256xf32>
    %138 = vector.broadcast %137 : vector<1x256xf32> to vector<8x256xf32>
    %139 = arith.mulf %138, %7 : vector<8x256xf32>
    %140 = arith.addf %136, %139 : vector<8x256xf32>
    %141 = vector.extract_strided_slice %9 {offsets = [3, 0], sizes = [1, 256], strides = [1, 1]} : vector<8x256xf32> to vector<1x256xf32>
    %142 = vector.broadcast %141 : vector<1x256xf32> to vector<8x256xf32>
    %143 = arith.mulf %142, %9 : vector<8x256xf32>
    %144 = arith.addf %140, %143 : vector<8x256xf32>
    %145 = vector.extract_strided_slice %11 {offsets = [3, 0], sizes = [1, 256], strides = [1, 1]} : vector<8x256xf32> to vector<1x256xf32>
    %146 = vector.broadcast %145 : vector<1x256xf32> to vector<8x256xf32>
    %147 = arith.mulf %146, %11 : vector<8x256xf32>
    %148 = arith.addf %144, %147 : vector<8x256xf32>
    %149 = vector.extract_strided_slice %13 {offsets = [3, 0], sizes = [1, 256], strides = [1, 1]} : vector<8x256xf32> to vector<1x256xf32>
    %150 = vector.broadcast %149 : vector<1x256xf32> to vector<8x256xf32>
    %151 = arith.mulf %150, %13 : vector<8x256xf32>
    %152 = arith.addf %148, %151 : vector<8x256xf32>
    %153 = vector.extract_strided_slice %15 {offsets = [3, 0], sizes = [1, 256], strides = [1, 1]} : vector<8x256xf32> to vector<1x256xf32>
    %154 = vector.broadcast %153 : vector<1x256xf32> to vector<8x256xf32>
    %155 = arith.mulf %154, %15 : vector<8x256xf32>
    %156 = arith.addf %152, %155 : vector<8x256xf32>
    %157 = vector.extract_strided_slice %17 {offsets = [3, 0], sizes = [1, 256], strides = [1, 1]} : vector<8x256xf32> to vector<1x256xf32>
    %158 = vector.broadcast %157 : vector<1x256xf32> to vector<8x256xf32>
    %159 = arith.mulf %158, %17 : vector<8x256xf32>
    %160 = arith.addf %156, %159 : vector<8x256xf32>
    %161 = vector.extract_strided_slice %19 {offsets = [3, 0], sizes = [1, 256], strides = [1, 1]} : vector<8x256xf32> to vector<1x256xf32>
    %162 = vector.broadcast %161 : vector<1x256xf32> to vector<8x256xf32>
    %163 = arith.mulf %162, %19 : vector<8x256xf32>
    %164 = arith.addf %160, %163 : vector<8x256xf32>
    %c3_i32 = arith.constant 3 : i32
    %165 = vector.broadcast %c3_i32 : i32 to vector<8x1xi32>
    %166 = arith.cmpi eq, %0, %165 : vector<8x1xi32>
    %cst_25 = arith.constant 9.99999997E-7 : f32
    %cst_26 = arith.constant 0.000000e+00 : f32
    %167 = vector.broadcast %cst_25 : f32 to vector<8x1xf32>
    %168 = vector.broadcast %cst_26 : f32 to vector<8x1xf32>
    %169 = arith.select %166, %167, %168 : vector<8x1xi1>, vector<8x1xf32>
    %170 = vector.broadcast %169 : vector<8x1xf32> to vector<8x256xf32>
    %171 = arith.addf %164, %170 : vector<8x256xf32>
    %172 = vector.extract_strided_slice %5 {offsets = [4, 0], sizes = [1, 256], strides = [1, 1]} : vector<8x256xf32> to vector<1x256xf32>
    %173 = vector.broadcast %172 : vector<1x256xf32> to vector<8x256xf32>
    %174 = arith.mulf %173, %5 : vector<8x256xf32>
    %175 = vector.extract_strided_slice %7 {offsets = [4, 0], sizes = [1, 256], strides = [1, 1]} : vector<8x256xf32> to vector<1x256xf32>
    %176 = vector.broadcast %175 : vector<1x256xf32> to vector<8x256xf32>
    %177 = arith.mulf %176, %7 : vector<8x256xf32>
    %178 = arith.addf %174, %177 : vector<8x256xf32>
    %179 = vector.extract_strided_slice %9 {offsets = [4, 0], sizes = [1, 256], strides = [1, 1]} : vector<8x256xf32> to vector<1x256xf32>
    %180 = vector.broadcast %179 : vector<1x256xf32> to vector<8x256xf32>
    %181 = arith.mulf %180, %9 : vector<8x256xf32>
    %182 = arith.addf %178, %181 : vector<8x256xf32>
    %183 = vector.extract_strided_slice %11 {offsets = [4, 0], sizes = [1, 256], strides = [1, 1]} : vector<8x256xf32> to vector<1x256xf32>
    %184 = vector.broadcast %183 : vector<1x256xf32> to vector<8x256xf32>
    %185 = arith.mulf %184, %11 : vector<8x256xf32>
    %186 = arith.addf %182, %185 : vector<8x256xf32>
    %187 = vector.extract_strided_slice %13 {offsets = [4, 0], sizes = [1, 256], strides = [1, 1]} : vector<8x256xf32> to vector<1x256xf32>
    %188 = vector.broadcast %187 : vector<1x256xf32> to vector<8x256xf32>
    %189 = arith.mulf %188, %13 : vector<8x256xf32>
    %190 = arith.addf %186, %189 : vector<8x256xf32>
    %191 = vector.extract_strided_slice %15 {offsets = [4, 0], sizes = [1, 256], strides = [1, 1]} : vector<8x256xf32> to vector<1x256xf32>
    %192 = vector.broadcast %191 : vector<1x256xf32> to vector<8x256xf32>
    %193 = arith.mulf %192, %15 : vector<8x256xf32>
    %194 = arith.addf %190, %193 : vector<8x256xf32>
    %195 = vector.extract_strided_slice %17 {offsets = [4, 0], sizes = [1, 256], strides = [1, 1]} : vector<8x256xf32> to vector<1x256xf32>
    %196 = vector.broadcast %195 : vector<1x256xf32> to vector<8x256xf32>
    %197 = arith.mulf %196, %17 : vector<8x256xf32>
    %198 = arith.addf %194, %197 : vector<8x256xf32>
    %199 = vector.extract_strided_slice %19 {offsets = [4, 0], sizes = [1, 256], strides = [1, 1]} : vector<8x256xf32> to vector<1x256xf32>
    %200 = vector.broadcast %199 : vector<1x256xf32> to vector<8x256xf32>
    %201 = arith.mulf %200, %19 : vector<8x256xf32>
    %202 = arith.addf %198, %201 : vector<8x256xf32>
    %c4_i32 = arith.constant 4 : i32
    %203 = vector.broadcast %c4_i32 : i32 to vector<8x1xi32>
    %204 = arith.cmpi eq, %0, %203 : vector<8x1xi32>
    %cst_27 = arith.constant 9.99999997E-7 : f32
    %cst_28 = arith.constant 0.000000e+00 : f32
    %205 = vector.broadcast %cst_27 : f32 to vector<8x1xf32>
    %206 = vector.broadcast %cst_28 : f32 to vector<8x1xf32>
    %207 = arith.select %204, %205, %206 : vector<8x1xi1>, vector<8x1xf32>
    %208 = vector.broadcast %207 : vector<8x1xf32> to vector<8x256xf32>
    %209 = arith.addf %202, %208 : vector<8x256xf32>
    %210 = vector.extract_strided_slice %5 {offsets = [5, 0], sizes = [1, 256], strides = [1, 1]} : vector<8x256xf32> to vector<1x256xf32>
    %211 = vector.broadcast %210 : vector<1x256xf32> to vector<8x256xf32>
    %212 = arith.mulf %211, %5 : vector<8x256xf32>
    %213 = vector.extract_strided_slice %7 {offsets = [5, 0], sizes = [1, 256], strides = [1, 1]} : vector<8x256xf32> to vector<1x256xf32>
    %214 = vector.broadcast %213 : vector<1x256xf32> to vector<8x256xf32>
    %215 = arith.mulf %214, %7 : vector<8x256xf32>
    %216 = arith.addf %212, %215 : vector<8x256xf32>
    %217 = vector.extract_strided_slice %9 {offsets = [5, 0], sizes = [1, 256], strides = [1, 1]} : vector<8x256xf32> to vector<1x256xf32>
    %218 = vector.broadcast %217 : vector<1x256xf32> to vector<8x256xf32>
    %219 = arith.mulf %218, %9 : vector<8x256xf32>
    %220 = arith.addf %216, %219 : vector<8x256xf32>
    %221 = vector.extract_strided_slice %11 {offsets = [5, 0], sizes = [1, 256], strides = [1, 1]} : vector<8x256xf32> to vector<1x256xf32>
    %222 = vector.broadcast %221 : vector<1x256xf32> to vector<8x256xf32>
    %223 = arith.mulf %222, %11 : vector<8x256xf32>
    %224 = arith.addf %220, %223 : vector<8x256xf32>
    %225 = vector.extract_strided_slice %13 {offsets = [5, 0], sizes = [1, 256], strides = [1, 1]} : vector<8x256xf32> to vector<1x256xf32>
    %226 = vector.broadcast %225 : vector<1x256xf32> to vector<8x256xf32>
    %227 = arith.mulf %226, %13 : vector<8x256xf32>
    %228 = arith.addf %224, %227 : vector<8x256xf32>
    %229 = vector.extract_strided_slice %15 {offsets = [5, 0], sizes = [1, 256], strides = [1, 1]} : vector<8x256xf32> to vector<1x256xf32>
    %230 = vector.broadcast %229 : vector<1x256xf32> to vector<8x256xf32>
    %231 = arith.mulf %230, %15 : vector<8x256xf32>
    %232 = arith.addf %228, %231 : vector<8x256xf32>
    %233 = vector.extract_strided_slice %17 {offsets = [5, 0], sizes = [1, 256], strides = [1, 1]} : vector<8x256xf32> to vector<1x256xf32>
    %234 = vector.broadcast %233 : vector<1x256xf32> to vector<8x256xf32>
    %235 = arith.mulf %234, %17 : vector<8x256xf32>
    %236 = arith.addf %232, %235 : vector<8x256xf32>
    %237 = vector.extract_strided_slice %19 {offsets = [5, 0], sizes = [1, 256], strides = [1, 1]} : vector<8x256xf32> to vector<1x256xf32>
    %238 = vector.broadcast %237 : vector<1x256xf32> to vector<8x256xf32>
    %239 = arith.mulf %238, %19 : vector<8x256xf32>
    %240 = arith.addf %236, %239 : vector<8x256xf32>
    %c5_i32 = arith.constant 5 : i32
    %241 = vector.broadcast %c5_i32 : i32 to vector<8x1xi32>
    %242 = arith.cmpi eq, %0, %241 : vector<8x1xi32>
    %cst_29 = arith.constant 9.99999997E-7 : f32
    %cst_30 = arith.constant 0.000000e+00 : f32
    %243 = vector.broadcast %cst_29 : f32 to vector<8x1xf32>
    %244 = vector.broadcast %cst_30 : f32 to vector<8x1xf32>
    %245 = arith.select %242, %243, %244 : vector<8x1xi1>, vector<8x1xf32>
    %246 = vector.broadcast %245 : vector<8x1xf32> to vector<8x256xf32>
    %247 = arith.addf %240, %246 : vector<8x256xf32>
    %248 = vector.extract_strided_slice %5 {offsets = [6, 0], sizes = [1, 256], strides = [1, 1]} : vector<8x256xf32> to vector<1x256xf32>
    %249 = vector.broadcast %248 : vector<1x256xf32> to vector<8x256xf32>
    %250 = arith.mulf %249, %5 : vector<8x256xf32>
    %251 = vector.extract_strided_slice %7 {offsets = [6, 0], sizes = [1, 256], strides = [1, 1]} : vector<8x256xf32> to vector<1x256xf32>
    %252 = vector.broadcast %251 : vector<1x256xf32> to vector<8x256xf32>
    %253 = arith.mulf %252, %7 : vector<8x256xf32>
    %254 = arith.addf %250, %253 : vector<8x256xf32>
    %255 = vector.extract_strided_slice %9 {offsets = [6, 0], sizes = [1, 256], strides = [1, 1]} : vector<8x256xf32> to vector<1x256xf32>
    %256 = vector.broadcast %255 : vector<1x256xf32> to vector<8x256xf32>
    %257 = arith.mulf %256, %9 : vector<8x256xf32>
    %258 = arith.addf %254, %257 : vector<8x256xf32>
    %259 = vector.extract_strided_slice %11 {offsets = [6, 0], sizes = [1, 256], strides = [1, 1]} : vector<8x256xf32> to vector<1x256xf32>
    %260 = vector.broadcast %259 : vector<1x256xf32> to vector<8x256xf32>
    %261 = arith.mulf %260, %11 : vector<8x256xf32>
    %262 = arith.addf %258, %261 : vector<8x256xf32>
    %263 = vector.extract_strided_slice %13 {offsets = [6, 0], sizes = [1, 256], strides = [1, 1]} : vector<8x256xf32> to vector<1x256xf32>
    %264 = vector.broadcast %263 : vector<1x256xf32> to vector<8x256xf32>
    %265 = arith.mulf %264, %13 : vector<8x256xf32>
    %266 = arith.addf %262, %265 : vector<8x256xf32>
    %267 = vector.extract_strided_slice %15 {offsets = [6, 0], sizes = [1, 256], strides = [1, 1]} : vector<8x256xf32> to vector<1x256xf32>
    %268 = vector.broadcast %267 : vector<1x256xf32> to vector<8x256xf32>
    %269 = arith.mulf %268, %15 : vector<8x256xf32>
    %270 = arith.addf %266, %269 : vector<8x256xf32>
    %271 = vector.extract_strided_slice %17 {offsets = [6, 0], sizes = [1, 256], strides = [1, 1]} : vector<8x256xf32> to vector<1x256xf32>
    %272 = vector.broadcast %271 : vector<1x256xf32> to vector<8x256xf32>
    %273 = arith.mulf %272, %17 : vector<8x256xf32>
    %274 = arith.addf %270, %273 : vector<8x256xf32>
    %275 = vector.extract_strided_slice %19 {offsets = [6, 0], sizes = [1, 256], strides = [1, 1]} : vector<8x256xf32> to vector<1x256xf32>
    %276 = vector.broadcast %275 : vector<1x256xf32> to vector<8x256xf32>
    %277 = arith.mulf %276, %19 : vector<8x256xf32>
    %278 = arith.addf %274, %277 : vector<8x256xf32>
    %c6_i32 = arith.constant 6 : i32
    %279 = vector.broadcast %c6_i32 : i32 to vector<8x1xi32>
    %280 = arith.cmpi eq, %0, %279 : vector<8x1xi32>
    %cst_31 = arith.constant 9.99999997E-7 : f32
    %cst_32 = arith.constant 0.000000e+00 : f32
    %281 = vector.broadcast %cst_31 : f32 to vector<8x1xf32>
    %282 = vector.broadcast %cst_32 : f32 to vector<8x1xf32>
    %283 = arith.select %280, %281, %282 : vector<8x1xi1>, vector<8x1xf32>
    %284 = vector.broadcast %283 : vector<8x1xf32> to vector<8x256xf32>
    %285 = arith.addf %278, %284 : vector<8x256xf32>
    %286 = vector.extract_strided_slice %5 {offsets = [7, 0], sizes = [1, 256], strides = [1, 1]} : vector<8x256xf32> to vector<1x256xf32>
    %287 = vector.broadcast %286 : vector<1x256xf32> to vector<8x256xf32>
    %288 = arith.mulf %287, %5 : vector<8x256xf32>
    %289 = vector.extract_strided_slice %7 {offsets = [7, 0], sizes = [1, 256], strides = [1, 1]} : vector<8x256xf32> to vector<1x256xf32>
    %290 = vector.broadcast %289 : vector<1x256xf32> to vector<8x256xf32>
    %291 = arith.mulf %290, %7 : vector<8x256xf32>
    %292 = arith.addf %288, %291 : vector<8x256xf32>
    %293 = vector.extract_strided_slice %9 {offsets = [7, 0], sizes = [1, 256], strides = [1, 1]} : vector<8x256xf32> to vector<1x256xf32>
    %294 = vector.broadcast %293 : vector<1x256xf32> to vector<8x256xf32>
    %295 = arith.mulf %294, %9 : vector<8x256xf32>
    %296 = arith.addf %292, %295 : vector<8x256xf32>
    %297 = vector.extract_strided_slice %11 {offsets = [7, 0], sizes = [1, 256], strides = [1, 1]} : vector<8x256xf32> to vector<1x256xf32>
    %298 = vector.broadcast %297 : vector<1x256xf32> to vector<8x256xf32>
    %299 = arith.mulf %298, %11 : vector<8x256xf32>
    %300 = arith.addf %296, %299 : vector<8x256xf32>
    %301 = vector.extract_strided_slice %13 {offsets = [7, 0], sizes = [1, 256], strides = [1, 1]} : vector<8x256xf32> to vector<1x256xf32>
    %302 = vector.broadcast %301 : vector<1x256xf32> to vector<8x256xf32>
    %303 = arith.mulf %302, %13 : vector<8x256xf32>
    %304 = arith.addf %300, %303 : vector<8x256xf32>
    %305 = vector.extract_strided_slice %15 {offsets = [7, 0], sizes = [1, 256], strides = [1, 1]} : vector<8x256xf32> to vector<1x256xf32>
    %306 = vector.broadcast %305 : vector<1x256xf32> to vector<8x256xf32>
    %307 = arith.mulf %306, %15 : vector<8x256xf32>
    %308 = arith.addf %304, %307 : vector<8x256xf32>
    %309 = vector.extract_strided_slice %17 {offsets = [7, 0], sizes = [1, 256], strides = [1, 1]} : vector<8x256xf32> to vector<1x256xf32>
    %310 = vector.broadcast %309 : vector<1x256xf32> to vector<8x256xf32>
    %311 = arith.mulf %310, %17 : vector<8x256xf32>
    %312 = arith.addf %308, %311 : vector<8x256xf32>
    %313 = vector.extract_strided_slice %19 {offsets = [7, 0], sizes = [1, 256], strides = [1, 1]} : vector<8x256xf32> to vector<1x256xf32>
    %314 = vector.broadcast %313 : vector<1x256xf32> to vector<8x256xf32>
    %315 = arith.mulf %314, %19 : vector<8x256xf32>
    %316 = arith.addf %312, %315 : vector<8x256xf32>
    %c7_i32 = arith.constant 7 : i32
    %317 = vector.broadcast %c7_i32 : i32 to vector<8x1xi32>
    %318 = arith.cmpi eq, %0, %317 : vector<8x1xi32>
    %cst_33 = arith.constant 9.99999997E-7 : f32
    %cst_34 = arith.constant 0.000000e+00 : f32
    %319 = vector.broadcast %cst_33 : f32 to vector<8x1xf32>
    %320 = vector.broadcast %cst_34 : f32 to vector<8x1xf32>
    %321 = arith.select %318, %319, %320 : vector<8x1xi1>, vector<8x1xf32>
    %322 = vector.broadcast %321 : vector<8x1xf32> to vector<8x256xf32>
    %323 = arith.addf %316, %322 : vector<8x256xf32>
    %cst_35 = arith.constant 0.000000e+00 : f32
    %324 = vector.broadcast %cst_35 : f32 to vector<1x256xf32>
    %cst_36 = arith.constant 0.000000e+00 : f32
    %325 = vector.broadcast %cst_36 : f32 to vector<1x256xf32>
    %326 = vector.extract_strided_slice %57 {offsets = [0, 0], sizes = [1, 256], strides = [1, 1]} : vector<8x256xf32> to vector<1x256xf32>
    %cst_37 = arith.constant 1.000000e-30 : f32
    %327 = vector.broadcast %cst_37 : f32 to vector<1x256xf32>
    %328 = arith.maximumf %326, %327 : vector<1x256xf32>
    %329 = math.rsqrt %328 : vector<1x256xf32>
    %c0_i32_38 = arith.constant 0 : i32
    %330 = vector.broadcast %c0_i32_38 : i32 to vector<8x1xi32>
    %331 = arith.cmpi sge, %0, %330 : vector<8x1xi32>
    %332 = vector.broadcast %329 : vector<1x256xf32> to vector<8x256xf32>
    %333 = arith.mulf %57, %332 : vector<8x256xf32>
    %cst_39 = arith.constant 0.000000e+00 : f32
    %334 = vector.shape_cast %331 : vector<8x1xi1> to vector<8x1xi1>
    %335 = vector.broadcast %334 : vector<8x1xi1> to vector<8x256xi1>
    %336 = vector.broadcast %cst_39 : f32 to vector<8x256xf32>
    %337 = arith.select %335, %333, %336 : vector<8x256xi1>, vector<8x256xf32>
    %338 = math.log %328 : vector<1x256xf32>
    %339 = arith.addf %324, %338 : vector<1x256xf32>
    %340 = vector.extract_strided_slice %3 {offsets = [0, 0], sizes = [1, 256], strides = [1, 1]} : vector<8x256xf32> to vector<1x256xf32>
    %341 = arith.mulf %340, %329 : vector<1x256xf32>
    %342 = arith.mulf %341, %341 : vector<1x256xf32>
    %343 = arith.addf %325, %342 : vector<1x256xf32>
    %344 = vector.broadcast %341 : vector<1x256xf32> to vector<8x256xf32>
    %345 = arith.mulf %337, %344 : vector<8x256xf32>
    %346 = arith.subf %3, %345 : vector<8x256xf32>
    %347 = vector.extract_strided_slice %337 {offsets = [1, 0], sizes = [1, 256], strides = [1, 1]} : vector<8x256xf32> to vector<1x256xf32>
    %348 = vector.broadcast %347 : vector<1x256xf32> to vector<8x256xf32>
    %349 = arith.mulf %348, %337 : vector<8x256xf32>
    %350 = arith.subf %95, %349 : vector<8x256xf32>
    %351 = vector.extract_strided_slice %337 {offsets = [2, 0], sizes = [1, 256], strides = [1, 1]} : vector<8x256xf32> to vector<1x256xf32>
    %352 = vector.broadcast %351 : vector<1x256xf32> to vector<8x256xf32>
    %353 = arith.mulf %352, %337 : vector<8x256xf32>
    %354 = arith.subf %133, %353 : vector<8x256xf32>
    %355 = vector.extract_strided_slice %337 {offsets = [3, 0], sizes = [1, 256], strides = [1, 1]} : vector<8x256xf32> to vector<1x256xf32>
    %356 = vector.broadcast %355 : vector<1x256xf32> to vector<8x256xf32>
    %357 = arith.mulf %356, %337 : vector<8x256xf32>
    %358 = arith.subf %171, %357 : vector<8x256xf32>
    %359 = vector.extract_strided_slice %337 {offsets = [4, 0], sizes = [1, 256], strides = [1, 1]} : vector<8x256xf32> to vector<1x256xf32>
    %360 = vector.broadcast %359 : vector<1x256xf32> to vector<8x256xf32>
    %361 = arith.mulf %360, %337 : vector<8x256xf32>
    %362 = arith.subf %209, %361 : vector<8x256xf32>
    %363 = vector.extract_strided_slice %337 {offsets = [5, 0], sizes = [1, 256], strides = [1, 1]} : vector<8x256xf32> to vector<1x256xf32>
    %364 = vector.broadcast %363 : vector<1x256xf32> to vector<8x256xf32>
    %365 = arith.mulf %364, %337 : vector<8x256xf32>
    %366 = arith.subf %247, %365 : vector<8x256xf32>
    %367 = vector.extract_strided_slice %337 {offsets = [6, 0], sizes = [1, 256], strides = [1, 1]} : vector<8x256xf32> to vector<1x256xf32>
    %368 = vector.broadcast %367 : vector<1x256xf32> to vector<8x256xf32>
    %369 = arith.mulf %368, %337 : vector<8x256xf32>
    %370 = arith.subf %285, %369 : vector<8x256xf32>
    %371 = vector.extract_strided_slice %337 {offsets = [7, 0], sizes = [1, 256], strides = [1, 1]} : vector<8x256xf32> to vector<1x256xf32>
    %372 = vector.broadcast %371 : vector<1x256xf32> to vector<8x256xf32>
    %373 = arith.mulf %372, %337 : vector<8x256xf32>
    %374 = arith.subf %323, %373 : vector<8x256xf32>
    %375 = vector.extract_strided_slice %350 {offsets = [1, 0], sizes = [1, 256], strides = [1, 1]} : vector<8x256xf32> to vector<1x256xf32>
    %cst_40 = arith.constant 1.000000e-30 : f32
    %376 = vector.broadcast %cst_40 : f32 to vector<1x256xf32>
    %377 = arith.maximumf %375, %376 : vector<1x256xf32>
    %378 = math.rsqrt %377 : vector<1x256xf32>
    %c1_i32_41 = arith.constant 1 : i32
    %379 = vector.broadcast %c1_i32_41 : i32 to vector<8x1xi32>
    %380 = arith.cmpi sge, %0, %379 : vector<8x1xi32>
    %381 = vector.broadcast %378 : vector<1x256xf32> to vector<8x256xf32>
    %382 = arith.mulf %350, %381 : vector<8x256xf32>
    %cst_42 = arith.constant 0.000000e+00 : f32
    %383 = vector.shape_cast %380 : vector<8x1xi1> to vector<8x1xi1>
    %384 = vector.broadcast %383 : vector<8x1xi1> to vector<8x256xi1>
    %385 = vector.broadcast %cst_42 : f32 to vector<8x256xf32>
    %386 = arith.select %384, %382, %385 : vector<8x256xi1>, vector<8x256xf32>
    %387 = math.log %377 : vector<1x256xf32>
    %388 = arith.addf %339, %387 : vector<1x256xf32>
    %389 = vector.extract_strided_slice %346 {offsets = [1, 0], sizes = [1, 256], strides = [1, 1]} : vector<8x256xf32> to vector<1x256xf32>
    %390 = arith.mulf %389, %378 : vector<1x256xf32>
    %391 = arith.mulf %390, %390 : vector<1x256xf32>
    %392 = arith.addf %343, %391 : vector<1x256xf32>
    %393 = vector.broadcast %390 : vector<1x256xf32> to vector<8x256xf32>
    %394 = arith.mulf %386, %393 : vector<8x256xf32>
    %395 = arith.subf %346, %394 : vector<8x256xf32>
    %396 = vector.extract_strided_slice %386 {offsets = [2, 0], sizes = [1, 256], strides = [1, 1]} : vector<8x256xf32> to vector<1x256xf32>
    %397 = vector.broadcast %396 : vector<1x256xf32> to vector<8x256xf32>
    %398 = arith.mulf %397, %386 : vector<8x256xf32>
    %399 = arith.subf %354, %398 : vector<8x256xf32>
    %400 = vector.extract_strided_slice %386 {offsets = [3, 0], sizes = [1, 256], strides = [1, 1]} : vector<8x256xf32> to vector<1x256xf32>
    %401 = vector.broadcast %400 : vector<1x256xf32> to vector<8x256xf32>
    %402 = arith.mulf %401, %386 : vector<8x256xf32>
    %403 = arith.subf %358, %402 : vector<8x256xf32>
    %404 = vector.extract_strided_slice %386 {offsets = [4, 0], sizes = [1, 256], strides = [1, 1]} : vector<8x256xf32> to vector<1x256xf32>
    %405 = vector.broadcast %404 : vector<1x256xf32> to vector<8x256xf32>
    %406 = arith.mulf %405, %386 : vector<8x256xf32>
    %407 = arith.subf %362, %406 : vector<8x256xf32>
    %408 = vector.extract_strided_slice %386 {offsets = [5, 0], sizes = [1, 256], strides = [1, 1]} : vector<8x256xf32> to vector<1x256xf32>
    %409 = vector.broadcast %408 : vector<1x256xf32> to vector<8x256xf32>
    %410 = arith.mulf %409, %386 : vector<8x256xf32>
    %411 = arith.subf %366, %410 : vector<8x256xf32>
    %412 = vector.extract_strided_slice %386 {offsets = [6, 0], sizes = [1, 256], strides = [1, 1]} : vector<8x256xf32> to vector<1x256xf32>
    %413 = vector.broadcast %412 : vector<1x256xf32> to vector<8x256xf32>
    %414 = arith.mulf %413, %386 : vector<8x256xf32>
    %415 = arith.subf %370, %414 : vector<8x256xf32>
    %416 = vector.extract_strided_slice %386 {offsets = [7, 0], sizes = [1, 256], strides = [1, 1]} : vector<8x256xf32> to vector<1x256xf32>
    %417 = vector.broadcast %416 : vector<1x256xf32> to vector<8x256xf32>
    %418 = arith.mulf %417, %386 : vector<8x256xf32>
    %419 = arith.subf %374, %418 : vector<8x256xf32>
    %420 = vector.extract_strided_slice %399 {offsets = [2, 0], sizes = [1, 256], strides = [1, 1]} : vector<8x256xf32> to vector<1x256xf32>
    %cst_43 = arith.constant 1.000000e-30 : f32
    %421 = vector.broadcast %cst_43 : f32 to vector<1x256xf32>
    %422 = arith.maximumf %420, %421 : vector<1x256xf32>
    %423 = math.rsqrt %422 : vector<1x256xf32>
    %c2_i32_44 = arith.constant 2 : i32
    %424 = vector.broadcast %c2_i32_44 : i32 to vector<8x1xi32>
    %425 = arith.cmpi sge, %0, %424 : vector<8x1xi32>
    %426 = vector.broadcast %423 : vector<1x256xf32> to vector<8x256xf32>
    %427 = arith.mulf %399, %426 : vector<8x256xf32>
    %cst_45 = arith.constant 0.000000e+00 : f32
    %428 = vector.shape_cast %425 : vector<8x1xi1> to vector<8x1xi1>
    %429 = vector.broadcast %428 : vector<8x1xi1> to vector<8x256xi1>
    %430 = vector.broadcast %cst_45 : f32 to vector<8x256xf32>
    %431 = arith.select %429, %427, %430 : vector<8x256xi1>, vector<8x256xf32>
    %432 = math.log %422 : vector<1x256xf32>
    %433 = arith.addf %388, %432 : vector<1x256xf32>
    %434 = vector.extract_strided_slice %395 {offsets = [2, 0], sizes = [1, 256], strides = [1, 1]} : vector<8x256xf32> to vector<1x256xf32>
    %435 = arith.mulf %434, %423 : vector<1x256xf32>
    %436 = arith.mulf %435, %435 : vector<1x256xf32>
    %437 = arith.addf %392, %436 : vector<1x256xf32>
    %438 = vector.broadcast %435 : vector<1x256xf32> to vector<8x256xf32>
    %439 = arith.mulf %431, %438 : vector<8x256xf32>
    %440 = arith.subf %395, %439 : vector<8x256xf32>
    %441 = vector.extract_strided_slice %431 {offsets = [3, 0], sizes = [1, 256], strides = [1, 1]} : vector<8x256xf32> to vector<1x256xf32>
    %442 = vector.broadcast %441 : vector<1x256xf32> to vector<8x256xf32>
    %443 = arith.mulf %442, %431 : vector<8x256xf32>
    %444 = arith.subf %403, %443 : vector<8x256xf32>
    %445 = vector.extract_strided_slice %431 {offsets = [4, 0], sizes = [1, 256], strides = [1, 1]} : vector<8x256xf32> to vector<1x256xf32>
    %446 = vector.broadcast %445 : vector<1x256xf32> to vector<8x256xf32>
    %447 = arith.mulf %446, %431 : vector<8x256xf32>
    %448 = arith.subf %407, %447 : vector<8x256xf32>
    %449 = vector.extract_strided_slice %431 {offsets = [5, 0], sizes = [1, 256], strides = [1, 1]} : vector<8x256xf32> to vector<1x256xf32>
    %450 = vector.broadcast %449 : vector<1x256xf32> to vector<8x256xf32>
    %451 = arith.mulf %450, %431 : vector<8x256xf32>
    %452 = arith.subf %411, %451 : vector<8x256xf32>
    %453 = vector.extract_strided_slice %431 {offsets = [6, 0], sizes = [1, 256], strides = [1, 1]} : vector<8x256xf32> to vector<1x256xf32>
    %454 = vector.broadcast %453 : vector<1x256xf32> to vector<8x256xf32>
    %455 = arith.mulf %454, %431 : vector<8x256xf32>
    %456 = arith.subf %415, %455 : vector<8x256xf32>
    %457 = vector.extract_strided_slice %431 {offsets = [7, 0], sizes = [1, 256], strides = [1, 1]} : vector<8x256xf32> to vector<1x256xf32>
    %458 = vector.broadcast %457 : vector<1x256xf32> to vector<8x256xf32>
    %459 = arith.mulf %458, %431 : vector<8x256xf32>
    %460 = arith.subf %419, %459 : vector<8x256xf32>
    %461 = vector.extract_strided_slice %444 {offsets = [3, 0], sizes = [1, 256], strides = [1, 1]} : vector<8x256xf32> to vector<1x256xf32>
    %cst_46 = arith.constant 1.000000e-30 : f32
    %462 = vector.broadcast %cst_46 : f32 to vector<1x256xf32>
    %463 = arith.maximumf %461, %462 : vector<1x256xf32>
    %464 = math.rsqrt %463 : vector<1x256xf32>
    %c3_i32_47 = arith.constant 3 : i32
    %465 = vector.broadcast %c3_i32_47 : i32 to vector<8x1xi32>
    %466 = arith.cmpi sge, %0, %465 : vector<8x1xi32>
    %467 = vector.broadcast %464 : vector<1x256xf32> to vector<8x256xf32>
    %468 = arith.mulf %444, %467 : vector<8x256xf32>
    %cst_48 = arith.constant 0.000000e+00 : f32
    %469 = vector.shape_cast %466 : vector<8x1xi1> to vector<8x1xi1>
    %470 = vector.broadcast %469 : vector<8x1xi1> to vector<8x256xi1>
    %471 = vector.broadcast %cst_48 : f32 to vector<8x256xf32>
    %472 = arith.select %470, %468, %471 : vector<8x256xi1>, vector<8x256xf32>
    %473 = math.log %463 : vector<1x256xf32>
    %474 = arith.addf %433, %473 : vector<1x256xf32>
    %475 = vector.extract_strided_slice %440 {offsets = [3, 0], sizes = [1, 256], strides = [1, 1]} : vector<8x256xf32> to vector<1x256xf32>
    %476 = arith.mulf %475, %464 : vector<1x256xf32>
    %477 = arith.mulf %476, %476 : vector<1x256xf32>
    %478 = arith.addf %437, %477 : vector<1x256xf32>
    %479 = vector.broadcast %476 : vector<1x256xf32> to vector<8x256xf32>
    %480 = arith.mulf %472, %479 : vector<8x256xf32>
    %481 = arith.subf %440, %480 : vector<8x256xf32>
    %482 = vector.extract_strided_slice %472 {offsets = [4, 0], sizes = [1, 256], strides = [1, 1]} : vector<8x256xf32> to vector<1x256xf32>
    %483 = vector.broadcast %482 : vector<1x256xf32> to vector<8x256xf32>
    %484 = arith.mulf %483, %472 : vector<8x256xf32>
    %485 = arith.subf %448, %484 : vector<8x256xf32>
    %486 = vector.extract_strided_slice %472 {offsets = [5, 0], sizes = [1, 256], strides = [1, 1]} : vector<8x256xf32> to vector<1x256xf32>
    %487 = vector.broadcast %486 : vector<1x256xf32> to vector<8x256xf32>
    %488 = arith.mulf %487, %472 : vector<8x256xf32>
    %489 = arith.subf %452, %488 : vector<8x256xf32>
    %490 = vector.extract_strided_slice %472 {offsets = [6, 0], sizes = [1, 256], strides = [1, 1]} : vector<8x256xf32> to vector<1x256xf32>
    %491 = vector.broadcast %490 : vector<1x256xf32> to vector<8x256xf32>
    %492 = arith.mulf %491, %472 : vector<8x256xf32>
    %493 = arith.subf %456, %492 : vector<8x256xf32>
    %494 = vector.extract_strided_slice %472 {offsets = [7, 0], sizes = [1, 256], strides = [1, 1]} : vector<8x256xf32> to vector<1x256xf32>
    %495 = vector.broadcast %494 : vector<1x256xf32> to vector<8x256xf32>
    %496 = arith.mulf %495, %472 : vector<8x256xf32>
    %497 = arith.subf %460, %496 : vector<8x256xf32>
    %498 = vector.extract_strided_slice %485 {offsets = [4, 0], sizes = [1, 256], strides = [1, 1]} : vector<8x256xf32> to vector<1x256xf32>
    %cst_49 = arith.constant 1.000000e-30 : f32
    %499 = vector.broadcast %cst_49 : f32 to vector<1x256xf32>
    %500 = arith.maximumf %498, %499 : vector<1x256xf32>
    %501 = math.rsqrt %500 : vector<1x256xf32>
    %c4_i32_50 = arith.constant 4 : i32
    %502 = vector.broadcast %c4_i32_50 : i32 to vector<8x1xi32>
    %503 = arith.cmpi sge, %0, %502 : vector<8x1xi32>
    %504 = vector.broadcast %501 : vector<1x256xf32> to vector<8x256xf32>
    %505 = arith.mulf %485, %504 : vector<8x256xf32>
    %cst_51 = arith.constant 0.000000e+00 : f32
    %506 = vector.shape_cast %503 : vector<8x1xi1> to vector<8x1xi1>
    %507 = vector.broadcast %506 : vector<8x1xi1> to vector<8x256xi1>
    %508 = vector.broadcast %cst_51 : f32 to vector<8x256xf32>
    %509 = arith.select %507, %505, %508 : vector<8x256xi1>, vector<8x256xf32>
    %510 = math.log %500 : vector<1x256xf32>
    %511 = arith.addf %474, %510 : vector<1x256xf32>
    %512 = vector.extract_strided_slice %481 {offsets = [4, 0], sizes = [1, 256], strides = [1, 1]} : vector<8x256xf32> to vector<1x256xf32>
    %513 = arith.mulf %512, %501 : vector<1x256xf32>
    %514 = arith.mulf %513, %513 : vector<1x256xf32>
    %515 = arith.addf %478, %514 : vector<1x256xf32>
    %516 = vector.broadcast %513 : vector<1x256xf32> to vector<8x256xf32>
    %517 = arith.mulf %509, %516 : vector<8x256xf32>
    %518 = arith.subf %481, %517 : vector<8x256xf32>
    %519 = vector.extract_strided_slice %509 {offsets = [5, 0], sizes = [1, 256], strides = [1, 1]} : vector<8x256xf32> to vector<1x256xf32>
    %520 = vector.broadcast %519 : vector<1x256xf32> to vector<8x256xf32>
    %521 = arith.mulf %520, %509 : vector<8x256xf32>
    %522 = arith.subf %489, %521 : vector<8x256xf32>
    %523 = vector.extract_strided_slice %509 {offsets = [6, 0], sizes = [1, 256], strides = [1, 1]} : vector<8x256xf32> to vector<1x256xf32>
    %524 = vector.broadcast %523 : vector<1x256xf32> to vector<8x256xf32>
    %525 = arith.mulf %524, %509 : vector<8x256xf32>
    %526 = arith.subf %493, %525 : vector<8x256xf32>
    %527 = vector.extract_strided_slice %509 {offsets = [7, 0], sizes = [1, 256], strides = [1, 1]} : vector<8x256xf32> to vector<1x256xf32>
    %528 = vector.broadcast %527 : vector<1x256xf32> to vector<8x256xf32>
    %529 = arith.mulf %528, %509 : vector<8x256xf32>
    %530 = arith.subf %497, %529 : vector<8x256xf32>
    %531 = vector.extract_strided_slice %522 {offsets = [5, 0], sizes = [1, 256], strides = [1, 1]} : vector<8x256xf32> to vector<1x256xf32>
    %cst_52 = arith.constant 1.000000e-30 : f32
    %532 = vector.broadcast %cst_52 : f32 to vector<1x256xf32>
    %533 = arith.maximumf %531, %532 : vector<1x256xf32>
    %534 = math.rsqrt %533 : vector<1x256xf32>
    %c5_i32_53 = arith.constant 5 : i32
    %535 = vector.broadcast %c5_i32_53 : i32 to vector<8x1xi32>
    %536 = arith.cmpi sge, %0, %535 : vector<8x1xi32>
    %537 = vector.broadcast %534 : vector<1x256xf32> to vector<8x256xf32>
    %538 = arith.mulf %522, %537 : vector<8x256xf32>
    %cst_54 = arith.constant 0.000000e+00 : f32
    %539 = vector.shape_cast %536 : vector<8x1xi1> to vector<8x1xi1>
    %540 = vector.broadcast %539 : vector<8x1xi1> to vector<8x256xi1>
    %541 = vector.broadcast %cst_54 : f32 to vector<8x256xf32>
    %542 = arith.select %540, %538, %541 : vector<8x256xi1>, vector<8x256xf32>
    %543 = math.log %533 : vector<1x256xf32>
    %544 = arith.addf %511, %543 : vector<1x256xf32>
    %545 = vector.extract_strided_slice %518 {offsets = [5, 0], sizes = [1, 256], strides = [1, 1]} : vector<8x256xf32> to vector<1x256xf32>
    %546 = arith.mulf %545, %534 : vector<1x256xf32>
    %547 = arith.mulf %546, %546 : vector<1x256xf32>
    %548 = arith.addf %515, %547 : vector<1x256xf32>
    %549 = vector.broadcast %546 : vector<1x256xf32> to vector<8x256xf32>
    %550 = arith.mulf %542, %549 : vector<8x256xf32>
    %551 = arith.subf %518, %550 : vector<8x256xf32>
    %552 = vector.extract_strided_slice %542 {offsets = [6, 0], sizes = [1, 256], strides = [1, 1]} : vector<8x256xf32> to vector<1x256xf32>
    %553 = vector.broadcast %552 : vector<1x256xf32> to vector<8x256xf32>
    %554 = arith.mulf %553, %542 : vector<8x256xf32>
    %555 = arith.subf %526, %554 : vector<8x256xf32>
    %556 = vector.extract_strided_slice %542 {offsets = [7, 0], sizes = [1, 256], strides = [1, 1]} : vector<8x256xf32> to vector<1x256xf32>
    %557 = vector.broadcast %556 : vector<1x256xf32> to vector<8x256xf32>
    %558 = arith.mulf %557, %542 : vector<8x256xf32>
    %559 = arith.subf %530, %558 : vector<8x256xf32>
    %560 = vector.extract_strided_slice %555 {offsets = [6, 0], sizes = [1, 256], strides = [1, 1]} : vector<8x256xf32> to vector<1x256xf32>
    %cst_55 = arith.constant 1.000000e-30 : f32
    %561 = vector.broadcast %cst_55 : f32 to vector<1x256xf32>
    %562 = arith.maximumf %560, %561 : vector<1x256xf32>
    %563 = math.rsqrt %562 : vector<1x256xf32>
    %c6_i32_56 = arith.constant 6 : i32
    %564 = vector.broadcast %c6_i32_56 : i32 to vector<8x1xi32>
    %565 = arith.cmpi sge, %0, %564 : vector<8x1xi32>
    %566 = vector.broadcast %563 : vector<1x256xf32> to vector<8x256xf32>
    %567 = arith.mulf %555, %566 : vector<8x256xf32>
    %cst_57 = arith.constant 0.000000e+00 : f32
    %568 = vector.shape_cast %565 : vector<8x1xi1> to vector<8x1xi1>
    %569 = vector.broadcast %568 : vector<8x1xi1> to vector<8x256xi1>
    %570 = vector.broadcast %cst_57 : f32 to vector<8x256xf32>
    %571 = arith.select %569, %567, %570 : vector<8x256xi1>, vector<8x256xf32>
    %572 = math.log %562 : vector<1x256xf32>
    %573 = arith.addf %544, %572 : vector<1x256xf32>
    %574 = vector.extract_strided_slice %551 {offsets = [6, 0], sizes = [1, 256], strides = [1, 1]} : vector<8x256xf32> to vector<1x256xf32>
    %575 = arith.mulf %574, %563 : vector<1x256xf32>
    %576 = arith.mulf %575, %575 : vector<1x256xf32>
    %577 = arith.addf %548, %576 : vector<1x256xf32>
    %578 = vector.broadcast %575 : vector<1x256xf32> to vector<8x256xf32>
    %579 = arith.mulf %571, %578 : vector<8x256xf32>
    %580 = arith.subf %551, %579 : vector<8x256xf32>
    %581 = vector.extract_strided_slice %571 {offsets = [7, 0], sizes = [1, 256], strides = [1, 1]} : vector<8x256xf32> to vector<1x256xf32>
    %582 = vector.broadcast %581 : vector<1x256xf32> to vector<8x256xf32>
    %583 = arith.mulf %582, %571 : vector<8x256xf32>
    %584 = arith.subf %559, %583 : vector<8x256xf32>
    %585 = vector.extract_strided_slice %584 {offsets = [7, 0], sizes = [1, 256], strides = [1, 1]} : vector<8x256xf32> to vector<1x256xf32>
    %cst_58 = arith.constant 1.000000e-30 : f32
    %586 = vector.broadcast %cst_58 : f32 to vector<1x256xf32>
    %587 = arith.maximumf %585, %586 : vector<1x256xf32>
    %588 = math.rsqrt %587 : vector<1x256xf32>
    %589 = math.log %587 : vector<1x256xf32>
    %590 = arith.addf %573, %589 : vector<1x256xf32>
    %591 = vector.extract_strided_slice %580 {offsets = [7, 0], sizes = [1, 256], strides = [1, 1]} : vector<8x256xf32> to vector<1x256xf32>
    %592 = arith.mulf %591, %588 : vector<1x256xf32>
    %593 = arith.mulf %592, %592 : vector<1x256xf32>
    %594 = arith.addf %577, %593 : vector<1x256xf32>
    %595 = arith.addf %590, %594 : vector<1x256xf32>
    %cst_59 = arith.constant 5.000000e-01 : f32
    %596 = vector.broadcast %cst_59 : f32 to vector<1x256xf32>
    %597 = arith.mulf %596, %595 : vector<1x256xf32>
    %c0_60 = arith.constant 0 : index
    %c0_61 = arith.constant 0 : index
    %598 = vector.load %arg4[%c0_60, %c0_61] : memref<1x256xf32, #tpu.memory_space<vmem>>, vector<1x256xf32>
    tpu.vector_store %arg4[%c0_60, %c0_61], %597 {strides = array<i32>} : memref<1x256xf32, #tpu.memory_space<vmem>>, vector<1x256xf32>,
    return
  }
  func.func @transform_0(%arg0: i32) -> (i32, i32) {
    %c0_i32 = arith.constant 0 : i32
    %c0_i32_0 = arith.constant 0 : i32
    return %c0_i32, %arg0 : i32, i32
  }
  func.func @transform_1(%arg0: i32) -> (i32, i32) {
    %c0_i32 = arith.constant 0 : i32
    %c0_i32_0 = arith.constant 0 : i32
    return %c0_i32, %arg0 : i32, i32
  }
  func.func @transform_2(%arg0: i32) -> (i32, i32, i32) {
    %c0_i32 = arith.constant 0 : i32
    %c0_i32_0 = arith.constant 0 : i32
    %c0_i32_1 = arith.constant 0 : i32
    return %c0_i32, %c0_i32_0, %arg0 : i32, i32, i32
  }
  func.func @transform_3(%arg0: i32) -> (i32, i32) {
    %c0_i32 = arith.constant 0 : i32
    %c0_i32_0 = arith.constant 0 : i32
    return %c0_i32, %arg0 : i32, i32
  }
}

</mosaic_0001>

<bundles_post_ra>
// kernel: tpu_custom_call.1
= control target key start
LH: loop header
LB: loop body
LE: loop exit
PB: predicated region body
PF: predicated region fallthrough
CT: control target
= control target key end

     0   :  { %8 = vsyncpa [#allocation3], 0  ;;  %s2842_s0 = inlined_call_operand.hbm [shape: f32[8,256], index: 0, kind: input, shape index: {}]   ;;  %s2843_s1 = inlined_call_operand.hbm [shape: f32[8,256], index: 1, kind: input, shape index: {}]   ;;  %s2844_s2 = inlined_call_operand.hbm [shape: f32[8,8,256], index: 2, kind: input, shape index: {}]   ;;  %s2845_s3 = inlined_call_operand.hbm [shape: f32[1,256], index: 3, kind: output, shape index: {}]  }
   0x1   :  { %9 = vsyncpa [#allocation6], 0 }
   0x2   :  { %10 = vsyncpa [#allocation4], 0  ;;  %s1814_s12 = smov [#allocation5]   ;;  %s1815_s14 = smov [#allocation2]  }
   0x3   :  { %s27_s13 = sshll.u32 %s1814_s12, 4  ;;  %s17_s15 = sshll.u32 %s1815_s14, 4  ;;  %s28_s13 = int_to_ptr.vmem [resolvable:$true] %s27_s13  ;;  %s18_s15 = int_to_ptr.vmem [resolvable:$true] %s17_s15 }
   0x4   :  { %s1720_s18 = scalar_lea.hbm %s2843_s1, 256 }
   0x5   :  { %p1721_p0 = scmp.ne.s32.totalorder %s2843_s1, %s1720_s18  ;;  %p1724_p1 = scmp.lt.u32.totalorder %s1720_s18, %s2843_s1 }
   0x7   :  { %p1726_p2 = pnand %p1724_p1, %p1721_p0 }
   0x9   :  { %1729 = shalt.err (!%p1726_p2)
}
   0xa   :  { %s1730_s23 = scalar_lea.vmem %s28_s13, 256  ;;  %p1735_p4 = scmp.lt.s32.totalorder %s28_s13, %s28_s13 }
   0xb   :  { %p1731_p3 = scmp.ne.s32.totalorder %s28_s13, %s1730_s23  ;;  %p1736_p5 = scmp.lt.s32.totalorder %s1730_s23, %s1730_s23 }
   0xd   :  { %p1737_p6 = por %p1736_p5, %p1735_p4 }
   0xf   :  { %p1738_p7 = pnand %p1737_p6, %p1731_p3 }
  0x11   :  { %1741 = shalt.err (!%p1738_p7)
}
  0x12   :  { %30 = dma.hbm_to_vmem [thread:$0]  %s2843_s1, 256, %s28_s13, [#allocation6]  }
  0x13   :  { %s1742_s28 = scalar_lea.hbm %s2842_s0, 256 }
  0x14   :  { %p1743_p8 = scmp.ne.s32.totalorder %s2842_s0, %s1742_s28  ;;  %p1746_p9 = scmp.lt.u32.totalorder %s1742_s28, %s2842_s0 }
  0x16   :  { %p1748_p10 = pnand %p1746_p9, %p1743_p8 }
  0x18   :  { %1751 = shalt.err (!%p1748_p10)
}
  0x19   :  { %s1752_s6 = scalar_lea.vmem %s18_s15, 256  ;;  %p1757_p12 = scmp.lt.s32.totalorder %s18_s15, %s18_s15 }
  0x1a   :  { %p1753_p11 = scmp.ne.s32.totalorder %s18_s15, %s1752_s6  ;;  %p1758_p13 = scmp.lt.s32.totalorder %s1752_s6, %s1752_s6 }
  0x1c   :  { %p1759_p0 = por %p1758_p13, %p1757_p12 }
  0x1e   :  { %p1760_p1 = pnand %p1759_p0, %p1753_p11 }
  0x20   :  { %1763 = shalt.err (!%p1760_p1)
}
  0x21   :  { %20 = dma.hbm_to_vmem [thread:$0]  %s2842_s0, 256, %s18_s15, [#allocation3]  }
  0x22   :  { %s1816_s8 = smov [#allocation7]   ;;  %s1764_s12 = scalar_lea.hbm %s2844_s2, 2048 }
  0x23   :  { %s36_s9 = sshll.u32 %s1816_s8, 4  ;;  %p1765_p2 = scmp.ne.s32.totalorder %s2844_s2, %s1764_s12  ;;  %s37_s9 = int_to_ptr.vmem [resolvable:$true] %s36_s9 }
  0x24   :  { %p1768_p3 = scmp.lt.u32.totalorder %s1764_s12, %s2844_s2 }
  0x26   :  { %p1770_p4 = pnand %p1768_p3, %p1765_p2 }
  0x28   :  { %1773 = shalt.err (!%p1770_p4)
}
  0x29   :  { %s1774_s18 = scalar_lea.vmem %s37_s9, 2048  ;;  %p1779_p6 = scmp.lt.s32.totalorder %s37_s9, %s37_s9 }
  0x2a   :  { %p1775_p5 = scmp.ne.s32.totalorder %s37_s9, %s1774_s18  ;;  %p1780_p7 = scmp.lt.s32.totalorder %s1774_s18, %s1774_s18 }
  0x2c   :  { %p1781_p8 = por %p1780_p7, %p1779_p6 }
  0x2e   :  { %p1782_p9 = pnand %p1781_p8, %p1775_p5 }
  0x30   :  { %1785 = shalt.err (!%p1782_p9)
}
  0x31   :  { %s1817_s0 = smov 256   ;;  %s1818_s15 = smov 16  }
  0x32   :  { %42 = dma.hbm_to_vmem [thread:$0]  %s2844_s2, 2048, %s37_s9, [#allocation6], %s1817_s0, %s1817_s0, %s1818_s15  }
  0x33   :  { %1808 = dma.done.wait [#allocation3], 256  }
  0x34   :  { %1809 = vsyncadd [#allocation3], 4294967040 }
  0x35   :  { %1810 = dma.done.wait [#allocation6], 2304  }
  0x36   :  { %1811 = vsyncadd [#allocation6], 4294964992  ;;  %v2846_v0 = vlaneseq  ;;  %v1884_v3 = vld [vmem:[#allocation7] sm:$0xff]  ;;  %v1886_v4 = vld [vmem:[#allocation7 + $0x8] sm:$0xff]  ;;  %v2847_v38 = vmov 0.0   ;;  %s1821_s2 = smov [#allocation8]  }
  0x37   :  { %v1888_v5 = vld [vmem:[#allocation7 + $0x10] sm:$0xff]  ;;  %v1890_v6 = vld [vmem:[#allocation7 + $0x18] sm:$0xff]  ;;  %v1894_v8 = vld [vmem:[#allocation7 + $0x20] sm:$0xff]  ;;  %s1637_s21 = sshll.u32 %s1821_s2, 4  ;;  %s1638_s21 = int_to_ptr.vmem [resolvable:$true] %s1637_s21 }
  0x38   :  { %v1879_v1 = vshrl.u32 %v2846_v0, 7  ;;  %v1902_v12 = vld [vmem:[#allocation7 + $0x28] sm:$0xff]  ;;  %v1907_v15 = vld [vmem:[#allocation7 + $0x30] sm:$0xff]  ;;  %v1914_v20 = vld [vmem:[#allocation7 + $0x38] sm:$0xff]  ;;  %s1786_s22 = scalar_lea.vmem %s1638_s21, 32  ;;  %p1791_p11 = scmp.lt.s32.totalorder %s1638_s21, %s1638_s21 }
  0x39   :  { %v1919_v23 = vld [vmem:[#allocation7 + $0x40] sm:$0xff]  ;;  %v1924_v28 = vld [vmem:[#allocation7 + $0x48] sm:$0xff]  ;;  %v1935_v32 = vld [vmem:[#allocation7 + $0x50] sm:$0xff]  ;;  %p1787_p10 = scmp.ne.s32.totalorder %s1638_s21, %s1786_s22  ;;  %p1792_p12 = scmp.lt.s32.totalorder %s1786_s22, %s1786_s22 }
  0x3a   :  { %v1882_v2 = vsub.s32 0, %v1879_v1  ;;  %v1927_v29 = vsub.s32 1, %v1879_v1  ;;  %vm177_vm0 = vcmp.eq.s32.totalorder %v1879_v1, 0  ;;  %vm275_vm1 = vcmp.eq.s32.totalorder %v1879_v1, 1  ;;  %v1937_v33 = vld [vmem:[#allocation7 + $0x58] sm:$0xff]  ;;  %v54_v45 = vld [vmem:[#allocation5] sm:$0xff] }
  0x3b   :  { %vm373_vm2 = vcmp.eq.s32.totalorder %v1879_v1, 2  ;;  %v1943_v39 = vsel %vm177_vm0, 1e-06, %v2847_v38  ;;  %v1950_v42 = vsel %vm275_vm1, 1e-06, %v2847_v38  ;;  %v1953_v43 = vsub.s32 2, %v1879_v1  ;;  %p1793_p13 = por %p1792_p12, %p1791_p11 }
  0x3c   :  { %v86_v7 = vrot.slane %v1884_v3, %v1882_v2  ;;  %v90_v9 = vrot.slane %v1886_v4, %v1882_v2  ;;  %v96_v10 = vrot.slane %v1888_v5, %v1882_v2  ;;  %v100_v11 = vrot.slane %v1890_v6, %v1882_v2  ;;  %2856 = vst [vmem:[#allocation12_spill] sm:$0xff] %v1927_v29  ;;  %v56_v46 = vld [vmem:[#allocation2] sm:$0xff]  ;;  %v1968_v52 = vld [vmem:[#allocation7 + $0x68] sm:$0xff]  ;;  %v1982_v62 = vld [vmem:[#allocation7 + $0x70] sm:$0xff] }
  0x3d   :  { %v108_v14 = vrot.slane %v1894_v8, %v1882_v2  ;;  %v112_v19 = vrot.slane %v1902_v12, %v1882_v2  ;;  %v120_v22 = vrot.slane %v1907_v15, %v1882_v2  ;;  %v124_v27 = vrot.slane %v1914_v20, %v1882_v2  ;;  %v1959_v47 = vld [vmem:[#allocation7 + $0x60] sm:$0xff]  ;;  %p1794_p0 = pnand %p1793_p13, %p1787_p10 }
  0x3e   :  { %v91_v13 = vmul.f32 %v86_v7, %v1884_v3  ;;  %v92_v16 = vmul.f32 %v90_v9, %v1886_v4  ;;  %v101_v17 = vmul.f32 %v96_v10, %v1888_v5  ;;  %v102_v18 = vmul.f32 %v100_v11, %v1890_v6  ;;  %v1994_v10 = vld [vmem:[#allocation7 + $0x78] sm:$0xff] }
  0x3f   :  { %v113_v21 = vmul.f32 %v108_v14, %v1894_v8  ;;  %v114_v26 = vmul.f32 %v112_v19, %v1902_v12  ;;  %v125_v30 = vmul.f32 %v120_v22, %v1907_v15  ;;  %v132_v31 = vrot.slane %v1919_v23, %v1882_v2 }
  0x40   :  { %v103_v24 = vadd.f32 %v101_v17, %v91_v13  ;;  %v104_v25 = vadd.f32 %v102_v18, %v92_v16  ;;  %v126_v36 = vmul.f32 %v124_v27, %v1914_v20  ;;  %v136_v37 = vrot.slane %v1924_v28, %v1882_v2 }
  0x41   :  { %v184_v40 = vrot.slane %v1884_v3, %v1927_v29  ;;  %v194_v41 = vrot.slane %v1888_v5, %v1927_v29  ;;  %v1956_v44 = vsel %vm373_vm2, 1e-06, %v2847_v38  ;;  %vm471_vm3 = vcmp.eq.s32.totalorder %v1879_v1, 3 }
  0x42   :  { %v115_v34 = vadd.f32 %v113_v21, %v103_v24  ;;  %v116_v35 = vadd.f32 %v114_v26, %v104_v25  ;;  %v137_v48 = vmul.f32 %v132_v31, %v1919_v23  ;;  %v144_v49 = vrot.slane %v1935_v32, %v1882_v2 }
  0x43   :  { %v148_v50 = vrot.slane %v1937_v33, %v1882_v2  ;;  %v188_v51 = vrot.slane %v1886_v4, %v1927_v29  ;;  %v138_v55 = vmul.f32 %v136_v37, %v1924_v28  ;;  %v198_v56 = vrot.slane %v1890_v6, %v1927_v29 }
  0x44   :  { %v127_v53 = vadd.f32 %v125_v30, %v115_v34  ;;  %v128_v54 = vadd.f32 %v126_v36, %v116_v35  ;;  %v189_v57 = vmul.f32 %v184_v40, %v1884_v3  ;;  %v199_v58 = vmul.f32 %v194_v41, %v1888_v5 }
  0x45   :  { %v206_v59 = vrot.slane %v1894_v8, %v1927_v29  ;;  %v1978_v60 = vsub.s32 3, %v1879_v1  ;;  %v1980_v61 = vsub.f32 %v54_v45, %v56_v46  ;;  %v156_v63 = vrot.slane %v1959_v47, %v1882_v2 }
  0x46   :  { %v1989_v7 = vsel %vm471_vm3, 1e-06, %v2847_v38  ;;  %v1992_v9 = vsub.s32 4, %v1879_v1  ;;  %v149_v11 = vmul.f32 %v144_v49, %v1935_v32  ;;  %v150_v13 = vmul.f32 %v148_v50, %v1937_v33 }
  0x47   :  { %2857 = vst [vmem:[#allocation13_spill] sm:$0xff] %v1978_v60  ;;  %2858 = vst [vmem:[#allocation14_spill] sm:$0xff] %v1989_v7  ;;  %v160_v14 = vrot.slane %v1968_v52, %v1882_v2  ;;  %v190_v16 = vmul.f32 %v188_v51, %v1886_v4  ;;  %v139_v17 = vadd.f32 %v137_v48, %v127_v53  ;;  %vm667_vm4 = vcmp.eq.s32.totalorder %v1879_v1, 5 }
  0x48   :  { %v140_v18 = vadd.f32 %v138_v55, %v128_v54  ;;  %v200_v19 = vmul.f32 %v198_v56, %v1890_v6  ;;  %v210_v21 = vrot.slane %v1902_v12, %v1927_v29  ;;  %v168_v22 = vrot.slane %v1982_v62, %v1882_v2 }
  0x49   :  { %v201_v24 = vadd.f32 %v199_v58, %v189_v57  ;;  %v211_v25 = vmul.f32 %v206_v59, %v1894_v8  ;;  %v218_v26 = vrot.slane %v1907_v15, %v1927_v29  ;;  %v172_v27 = vrot.slane %v1994_v10, %v1882_v2  ;;  %v55_v58 = vld [vmem:[#allocation5 + $0x8] sm:$0xff]  ;;  %v57_v59 = vld [vmem:[#allocation2 + $0x8] sm:$0xff] }
  0x4a   :  { %v222_v30 = vrot.slane %v1914_v20, %v1927_v29  ;;  %v282_v31 = vrot.slane %v1884_v3, %v1953_v43  ;;  %v286_v34 = vrot.slane %v1886_v4, %v1953_v43  ;;  %v161_v35 = vmul.f32 %v156_v63, %v1959_v47 }
  0x4b   :  { %v162_v36 = vmul.f32 %v160_v14, %v1968_v52  ;;  %v292_v37 = vrot.slane %v1888_v5, %v1953_v43  ;;  %v296_v40 = vrot.slane %v1890_v6, %v1953_v43  ;;  %v151_v41 = vadd.f32 %v149_v11, %v139_v17 }
  0x4c   :  { %v152_v45 = vadd.f32 %v150_v13, %v140_v18  ;;  %v202_v46 = vadd.f32 %v200_v19, %v190_v16  ;;  %v212_v48 = vmul.f32 %v210_v21, %v1902_v12  ;;  %v173_v49 = vmul.f32 %v168_v22, %v1982_v62 }
  0x4d   :  { %v213_v50 = vadd.f32 %v211_v25, %v201_v24  ;;  %v223_v51 = vmul.f32 %v218_v26, %v1907_v15  ;;  %v230_v53 = vrot.slane %v1919_v23, %v1927_v29  ;;  %v174_v54 = vmul.f32 %v172_v27, %v1994_v10 }
  0x4e   :  { %v224_v55 = vmul.f32 %v222_v30, %v1914_v20  ;;  %v287_v56 = vmul.f32 %v282_v31, %v1884_v3  ;;  %v288_v57 = vmul.f32 %v286_v34, %v1886_v4  ;;  %v297_v63 = vmul.f32 %v292_v37, %v1888_v5 }
  0x4f   :  { %v298_v11 = vmul.f32 %v296_v40, %v1890_v6  ;;  %v304_v13 = vrot.slane %v1894_v8, %v1953_v43  ;;  %v308_v14 = vrot.slane %v1902_v12, %v1953_v43  ;;  %v163_v16 = vadd.f32 %v161_v35, %v151_v41 }
  0x50   :  { %v164_v17 = vadd.f32 %v162_v36, %v152_v45  ;;  %v214_v18 = vadd.f32 %v212_v48, %v202_v46  ;;  %v234_v19 = vrot.slane %v1924_v28, %v1927_v29  ;;  %v225_v21 = vadd.f32 %v223_v51, %v213_v50 }
  0x51   :  { %v235_v22 = vmul.f32 %v230_v53, %v1919_v23  ;;  %v242_v24 = vrot.slane %v1935_v32, %v1927_v29  ;;  %v246_v25 = vrot.slane %v1937_v33, %v1927_v29  ;;  %v2045_v26 = vsub.f32 %v55_v58, %v57_v59 }
  0x52   :  { %v316_v27 = vrot.slane %v1907_v15, %v1953_v43  ;;  %v320_v30 = vrot.slane %v1914_v20, %v1953_v43  ;;  %v2052_v31 = vsub.s32 5, %v1879_v1  ;;  %v299_v34 = vadd.f32 %v297_v63, %v287_v56 }
  0x53   :  { %v300_v35 = vadd.f32 %v298_v11, %v288_v57  ;;  %v309_v36 = vmul.f32 %v304_v13, %v1894_v8  ;;  %v310_v37 = vmul.f32 %v308_v14, %v1902_v12  ;;  %v175_v40 = vadd.f32 %v173_v49, %v163_v16 }
  0x54   :  { %v2056_v41 = vadd.f32 %v174_v54, %v164_v17  ;;  %v226_v45 = vadd.f32 %v224_v55, %v214_v18  ;;  %v236_v46 = vmul.f32 %v234_v19, %v1924_v28  ;;  %v237_v48 = vadd.f32 %v235_v22, %v225_v21 }
  0x55   :  { %v247_v50 = vmul.f32 %v242_v24, %v1935_v32  ;;  %v248_v51 = vmul.f32 %v246_v25, %v1937_v33  ;;  %v254_v53 = vrot.slane %v1959_v47, %v1927_v29  ;;  %v321_v56 = vmul.f32 %v316_v27, %v1907_v15 }
  0x56   :  { %v322_v57 = vmul.f32 %v320_v30, %v1914_v20  ;;  %v380_v49 = vrot.slane %v1884_v3, %v1978_v60  ;;  %v390_v54 = vrot.slane %v1888_v5, %v1978_v60  ;;  %v311_v55 = vadd.f32 %v309_v36, %v299_v34 }
  0x57   :  { %v312_v58 = vadd.f32 %v310_v37, %v300_v35  ;;  %v328_v59 = vrot.slane %v1919_v23, %v1953_v43  ;;  %v332_v63 = vrot.slane %v1924_v28, %v1953_v43  ;;  %v238_v11 = vadd.f32 %v236_v46, %v226_v45 }
  0x58   :  { %v258_v13 = vrot.slane %v1968_v52, %v1927_v29  ;;  %v266_v14 = vrot.slane %v1982_v62, %v1927_v29  ;;  %v270_v16 = vrot.slane %v1994_v10, %v1927_v29  ;;  %v259_v17 = vmul.f32 %v254_v53, %v1959_v47 }
  0x59   :  { %v340_v18 = vrot.slane %v1935_v32, %v1953_v43  ;;  %v344_v19 = vrot.slane %v1937_v33, %v1953_v43  ;;  %v384_v21 = vrot.slane %v1886_v4, %v1978_v60  ;;  %v385_v22 = vmul.f32 %v380_v49, %v1884_v3 }
  0x5a   :  { %v394_v24 = vrot.slane %v1890_v6, %v1978_v60  ;;  %v395_v25 = vmul.f32 %v390_v54, %v1888_v5  ;;  %v402_v27 = vrot.slane %v1894_v8, %v1978_v60  ;;  %v323_v30 = vadd.f32 %v321_v56, %v311_v55 }
  0x5b   :  { %v324_v34 = vadd.f32 %v322_v57, %v312_v58  ;;  %v333_v35 = vmul.f32 %v328_v59, %v1919_v23  ;;  %v334_v36 = vmul.f32 %v332_v63, %v1924_v28  ;;  %v249_v37 = vadd.f32 %v247_v50, %v237_v48 }
  0x5c   :  { %v250_v45 = vadd.f32 %v248_v51, %v238_v11  ;;  %v260_v46 = vmul.f32 %v258_v13, %v1968_v52  ;;  %v271_v53 = vmul.f32 %v266_v14, %v1982_v62  ;;  %v345_v49 = vmul.f32 %v340_v18, %v1935_v32 }
  0x5d   :  { %v352_v54 = vrot.slane %v1959_v47, %v1953_v43  ;;  %v386_v0 = vmul.f32 %v384_v21, %v1886_v4  ;;  %v406_v56 = vrot.slane %v1902_v12, %v1978_v60  ;;  %v396_v57 = vmul.f32 %v394_v24, %v1890_v6 }
  0x5e   :  { %v397_v55 = vadd.f32 %v395_v25, %v385_v22  ;;  %v407_v48 = vmul.f32 %v402_v27, %v1894_v8  ;;  %v414_v50 = vrot.slane %v1907_v15, %v1978_v60  ;;  %v335_v51 = vadd.f32 %v333_v35, %v323_v30 }
  0x5f   :  { %v336_v58 = vadd.f32 %v334_v36, %v324_v34  ;;  %v346_v59 = vmul.f32 %v344_v19, %v1937_v33  ;;  %v356_v63 = vrot.slane %v1968_v52, %v1953_v43  ;;  %v261_v11 = vadd.f32 %v259_v17, %v249_v37 }
  0x60   :  { %v262_v13 = vadd.f32 %v260_v46, %v250_v45  ;;  %v272_v14 = vmul.f32 %v270_v16, %v1994_v10  ;;  %v364_v18 = vrot.slane %v1982_v62, %v1953_v43  ;;  %v2113_v21 = vadd.f32 %v1943_v39, %v175_v40 }
  0x61   :  { %v357_v22 = vmul.f32 %v352_v54, %v1959_v47  ;;  %v408_v24 = vmul.f32 %v406_v56, %v1902_v12  ;;  %v418_v19 = vrot.slane %v1914_v20, %v1978_v60  ;;  %v398_v25 = vadd.f32 %v396_v57, %v386_v0 }
  0x62   :  { %v409_v27 = vadd.f32 %v407_v48, %v397_v55  ;;  %v419_v17 = vmul.f32 %v414_v50, %v1907_v15  ;;  %v426_v16 = vrot.slane %v1919_v23, %v1978_v60  ;;  %v347_v30 = vadd.f32 %v345_v49, %v335_v51 }
  0x63   :  { %v348_v34 = vadd.f32 %v346_v59, %v336_v58  ;;  %v358_v35 = vmul.f32 %v356_v63, %v1968_v52  ;;  %v368_v40 = vrot.slane %v1994_v10, %v1953_v43  ;;  %v2127_v36 = vadd.f32 %v1943_v39, %v2056_v41 }
  0x64   :  { %v273_v37 = vadd.f32 %v271_v53, %v261_v11  ;;  %v274_v45 = vadd.f32 %v272_v14, %v262_v13  ;;  %v369_v0 = vmul.f32 %v364_v18, %v1982_v62  ;;  %v420_v46 = vmul.f32 %v418_v19, %v1914_v20 }
  0x65   :  { %v430_v54 = vrot.slane %v1924_v28, %v1978_v60  ;;  %v576_v49 = vrot.slane %v1884_v3, %v2052_v31  ;;  %v586_v56 = vrot.slane %v1888_v5, %v2052_v31  ;;  %v410_v57 = vadd.f32 %v408_v24, %v398_v25 }
  0x66   :  { %v421_v55 = vadd.f32 %v419_v17, %v409_v27  ;;  %v431_v39 = vmul.f32 %v426_v16, %v1919_v23  ;;  %v438_v41 = vrot.slane %v1935_v32, %v1978_v60  ;;  %v359_v53 = vadd.f32 %v357_v22, %v347_v30 }
  0x67   :  { %v360_v48 = vadd.f32 %v358_v35, %v348_v34  ;;  %v370_v50 = vmul.f32 %v368_v40, %v1994_v10  ;;  %v442_v51 = vrot.slane %v1937_v33, %v1978_v60  ;;  %v2144_v58 = vadd.f32 %v1950_v42, %v273_v37 }
  0x68   :  { %v2147_v59 = vadd.f32 %v1950_v42, %v274_v45  ;;  %v580_v63 = vrot.slane %v1886_v4, %v2052_v31  ;;  %v590_v11 = vrot.slane %v1890_v6, %v2052_v31  ;;  %v432_v13 = vmul.f32 %v430_v54, %v1924_v28 }
  0x69   :  { %v581_v14 = vmul.f32 %v576_v49, %v1884_v3  ;;  %v591_v18 = vmul.f32 %v586_v56, %v1888_v5  ;;  %v598_v22 = vrot.slane %v1894_v8, %v2052_v31  ;;  %v422_v24 = vadd.f32 %v420_v46, %v410_v57 }
  0x6a   :  { %v433_v19 = vadd.f32 %v431_v39, %v421_v55  ;;  %v443_v42 = vmul.f32 %v438_v41, %v1935_v32  ;;  %v450_v25 = vrot.slane %v1959_v47, %v1978_v60  ;;  %v371_v27 = vadd.f32 %v369_v0, %v359_v53 }
  0x6b   :  { %v372_v17 = vadd.f32 %v370_v50, %v360_v48  ;;  %v444_v16 = vmul.f32 %v442_v51, %v1937_v33  ;;  %v454_v30 = vrot.slane %v1968_v52, %v1978_v60  ;;  %v462_v34 = vrot.slane %v1982_v62, %v1978_v60 }
  0x6c   :  { %v582_v35 = vmul.f32 %v580_v63, %v1886_v4  ;;  %v592_v40 = vmul.f32 %v590_v11, %v1890_v6  ;;  %v602_v37 = vrot.slane %v1902_v12, %v2052_v31  ;;  %v466_v45 = vrot.slane %v1994_v10, %v1978_v60 }
  0x6d   :  { %v593_v0 = vadd.f32 %v591_v18, %v581_v14  ;;  %v603_v46 = vmul.f32 %v598_v22, %v1894_v8  ;;  %v610_v54 = vrot.slane %v1907_v15, %v2052_v31  ;;  %v434_v49 = vadd.f32 %v432_v13, %v422_v24 }
  0x6e   :  { %v445_v56 = vadd.f32 %v443_v42, %v433_v19  ;;  %v455_v57 = vmul.f32 %v450_v25, %v1959_v47  ;;  %v478_v55 = vrot.slane %v1884_v3, %v1992_v9  ;;  %v2179_v39 = vadd.f32 %v1956_v44, %v371_v27 }
  0x6f   :  { %v2182_v41 = vadd.f32 %v1956_v44, %v372_v17  ;;  %v456_v53 = vmul.f32 %v454_v30, %v1968_v52  ;;  %v482_v48 = vrot.slane %v1886_v4, %v1992_v9  ;;  %v488_v50 = vrot.slane %v1888_v5, %v1992_v9 }
  0x70   :  { %v594_v51 = vadd.f32 %v592_v40, %v582_v35  ;;  %v604_v63 = vmul.f32 %v602_v37, %v1902_v12  ;;  %v614_v11 = vrot.slane %v1914_v20, %v2052_v31  ;;  %v467_v13 = vmul.f32 %v462_v34, %v1982_v62 }
  0x71   :  { %v605_v14 = vadd.f32 %v603_v46, %v593_v0  ;;  %v615_v44 = vmul.f32 %v610_v54, %v1907_v15  ;;  %v622_v18 = vrot.slane %v1919_v23, %v2052_v31  ;;  %v446_v22 = vadd.f32 %v444_v16, %v434_v49 }
  0x72   :  { %v457_v24 = vadd.f32 %v455_v57, %v445_v56  ;;  %v2197_v19 = vmul.f32 %v466_v45, %v1994_v10  ;;  %v483_v42 = vmul.f32 %v478_v55, %v1884_v3  ;;  %v2201_v25 = vmul.f32 %v482_v48, %v1886_v4 }
  0x73   :  { %v492_v27 = vrot.slane %v1890_v6, %v1992_v9  ;;  %v500_v17 = vrot.slane %v1894_v8, %v1992_v9  ;;  %v504_v30 = vrot.slane %v1902_v12, %v1992_v9  ;;  %v493_v16 = vmul.f32 %v488_v50, %v1888_v5 }
  0x74   :  { %2859 = vst [vmem:[#allocation15_spill] sm:$0xff] %v2197_v19  ;;  %v606_v34 = vadd.f32 %v604_v63, %v594_v51  ;;  %v616_v35 = vmul.f32 %v614_v11, %v1914_v20  ;;  %v626_v40 = vrot.slane %v1924_v28, %v2052_v31  ;;  %v512_v37 = vrot.slane %v1907_v15, %v1992_v9 }
  0x75   :  { %v617_v45 = vadd.f32 %v615_v44, %v605_v14  ;;  %v627_v0 = vmul.f32 %v622_v18, %v1919_v23  ;;  %v634_v46 = vrot.slane %v1935_v32, %v2052_v31  ;;  %v2218_v54 = vadd.f32 %v456_v53, %v446_v22 }
  0x76   :  { %v2220_v49 = vadd.f32 %v467_v13, %v457_v24  ;;  %v638_v57 = vrot.slane %v1937_v33, %v2052_v31  ;;  %v2227_v55 = vmul.f32 %v492_v27, %v1890_v6  ;;  %v2230_v48 = vmul.f32 %v500_v17, %v1894_v8 }
  0x77   :  { %2860 = vst [vmem:[#allocation16_spill] sm:$0xff] %v2218_v54  ;;  %v2233_v50 = vmul.f32 %v504_v30, %v1902_v12  ;;  %v2236_v53 = vsub.s32 6, %v1879_v1  ;;  %v2238_v51 = vadd.f32 %v493_v16, %v483_v42  ;;  %v618_v63 = vadd.f32 %v616_v35, %v606_v34 }
  0x78   :  { %2861 = vst [vmem:[#allocation17_spill] sm:$0xff] %v2220_v49  ;;  %v628_v11 = vmul.f32 %v626_v40, %v1924_v28  ;;  %v646_v13 = vrot.slane %v1959_v47, %v2052_v31  ;;  %v2244_v14 = vmul.f32 %v512_v37, %v1907_v15  ;;  %v629_v44 = vadd.f32 %v627_v0, %v617_v45 }
  0x79   :  { %2862 = vst [vmem:[#allocation18_spill] sm:$0xff] %v2233_v50  ;;  %v639_v18 = vmul.f32 %v634_v46, %v1935_v32  ;;  %v2248_v22 = vsub.s32 7, %v1879_v1  ;;  %v640_v24 = vmul.f32 %v638_v57, %v1937_v33  ;;  %v650_v42 = vrot.slane %v1968_v52, %v2052_v31 }
  0x7a   :  { %2863 = vst [vmem:[#allocation19_spill] sm:$0xff] %v2244_v14  ;;  %v658_v27 = vrot.slane %v1982_v62, %v2052_v31  ;;  %v2852_v17 = vmax.f32 %v2113_v21, 1e-30  ;;  %v674_v30 = vrot.slane %v1884_v3, %v2236_v53  ;;  %v678_v16 = vrot.slane %v1886_v4, %v2236_v53 }
  0x7b   :  { %v684_v34 = vrot.slane %v1888_v5, %v2236_v53  ;;  %v688_v35 = vrot.slane %v1890_v6, %v2236_v53  ;;  %v630_v40 = vadd.f32 %v628_v11, %v618_v63  ;;  %v651_v37 = vmul.f32 %v646_v13, %v1959_v47 }
  0x7c   :  { %v662_v45 = vrot.slane %v1994_v10, %v2052_v31  ;;  %v696_v0 = vrot.slane %v1894_v8, %v2236_v53  ;;  %v641_v46 = vadd.f32 %v639_v18, %v629_v44  ;;  %v700_v57 = vrot.slane %v1902_v12, %v2236_v53 }
  0x7d   :  { %v772_v38 = vrot.slane %v1884_v3, %v2248_v22  ;;  %v782_v56 = vrot.slane %v1888_v5, %v2248_v22  ;;  %v776_v63 = vrot.slane %v1886_v4, %v2248_v22  ;;  %v786_v11 = vrot.slane %v1890_v6, %v2248_v22 }
  0x7e   :  { %v2853_v13 = vmax.f32 %v2127_v36, 1e-30  ;;  %1655 = vrsqrt.f32 %v2852_v17  ;;  %v679_v44 = vmul.f32 %v674_v30, %v1884_v3  ;;  %v680_v18 = vmul.f32 %v678_v16, %v1886_v4 }
  0x7f   :  { %v689_v7 = vmul.f32 %v684_v34, %v1888_v5  ;;  %v690_v49 = vmul.f32 %v688_v35, %v1890_v6  ;;  %v642_v19 = vadd.f32 %v640_v24, %v630_v40  ;;  %v652_v54 = vmul.f32 %v650_v42, %v1968_v52 }
  0x80   :  { %v701_v60 = vmul.f32 %v696_v0, %v1894_v8  ;;  %1657 = vrsqrt.f32 %v2853_v13  ;;  %v702_v14 = vmul.f32 %v700_v57, %v1902_v12  ;;  %v777_v17 = vmul.f32 %v772_v38, %v1884_v3 }
  0x81   :  { %v787_v30 = vmul.f32 %v782_v56, %v1888_v5  ;;  %v794_v16 = vrot.slane %v1894_v8, %v2248_v22  ;;  %v708_v34 = vrot.slane %v1907_v15, %v2236_v53  ;;  %v778_v24 = vmul.f32 %v776_v63, %v1886_v4 }
  0x82   :  { %v788_v42 = vmul.f32 %v786_v11, %v1890_v6  ;;  %v798_v35 = vrot.slane %v1902_v12, %v2248_v22  ;;  %v691_v40 = vadd.f32 %v689_v7, %v679_v44  ;;  %v692_v0 = vadd.f32 %v690_v49, %v680_v18 }
  0x83   :  { %v712_v3 = vrot.slane %v1914_v20, %v2236_v53  ;;  %v720_v5 = vrot.slane %v1919_v23, %v2236_v53  ;;  %v2305_v38 = vadd.f32 %v651_v37, %v641_v46  ;;  %v2308_v56 = vmul.f32 %v658_v27, %v1982_v62 }
  0x84   :  { %v2311_v4 = vmul.f32 %v662_v45, %v1994_v10  ;;  %v724_v6 = vrot.slane %v1924_v28, %v2236_v53  ;;  %v2315_v57 = vadd.f32 %v652_v54, %v642_v19  ;;  %v789_v7 = vadd.f32 %v787_v30, %v777_v17 }
  0x85   :  { %v799_v49 = vmul.f32 %v794_v16, %v1894_v8  ;;  %v806_v63 = vrot.slane %v1907_v15, %v2248_v22  ;;  %v713_v37 = vmul.f32 %v708_v34, %v1907_v15  ;;  %v790_v46 = vadd.f32 %v788_v42, %v778_v24 }
  0x86   :  { %v800_v27 = vmul.f32 %v798_v35, %v1902_v12  ;;  %v810_v45 = vrot.slane %v1914_v20, %v2248_v22  ;;  %v703_v11 = vadd.f32 %v701_v60, %v691_v40  ;;  %v704_v44 = vadd.f32 %v702_v14, %v692_v0 }
  0x87   :  { %v714_v18 = vmul.f32 %v712_v3, %v1914_v20  ;;  %v725_v19 = vmul.f32 %v720_v5, %v1919_v23  ;;  %v726_v8 = vmul.f32 %v724_v6, %v1924_v28  ;;  %v732_v17 = vrot.slane %v1935_v32, %v2236_v53 }
  0x88   :  { %v1656_v54 = vpop.eup %1655  ;;  %v736_v30 = vrot.slane %v1937_v33, %v2236_v53  ;;  %v818_v12 = vrot.slane %v1919_v23, %v2248_v22  ;;  %v801_v16 = vadd.f32 %v799_v49, %v789_v7  ;;  %v811_v60 = vmul.f32 %v806_v63, %v1907_v15 }
  0x89   :  { %v875_v14 = vrot.slane %v1656_v54, %v1882_v2  ;;  %v2336_v34 = vmul.f32 %v1656_v54, %v1980_v61  ;;  %v744_v42 = vrot.slane %v1959_v47, %v2236_v53  ;;  %v802_v35 = vadd.f32 %v800_v27, %v790_v46 }
  0x8a   :  { %v1658_v24 = vpop.eup %1657  ;;  %v812_v40 = vmul.f32 %v810_v45, %v1914_v20  ;;  %v822_v0 = vrot.slane %v1924_v28, %v2248_v22  ;;  %v715_v3 = vadd.f32 %v713_v37, %v703_v11  ;;  %v716_v7 = vadd.f32 %v714_v18, %v704_v44 }
  0x8b   :  { %v879_v5 = vrot.slane %v1658_v24, %v1882_v2  ;;  %v2345_v15 = vmul.f32 %v875_v14, %v2113_v21  ;;  %v2348_v6 = vmul.f32 %v1658_v24, %v2045_v26  ;;  %v823_v49 = vmul.f32 %v818_v12, %v1919_v23 }
  0x8c   :  { %v830_v63 = vrot.slane %v1935_v32, %v2248_v22  ;;  %v901_v46 = vrot.slane %v2336_v34, %v1882_v2  ;;  %v813_v37 = vadd.f32 %v811_v60, %v801_v16  ;;  %v814_v54 = vadd.f32 %v812_v40, %v802_v35 }
  0x8d   :  { %v2357_v27 = vmul.f32 %v879_v5, %v2127_v36  ;;  %v905_v45 = vrot.slane %v2348_v6, %v1882_v2  ;;  %v913_v11 = vrot.slane %v2345_v15, %v1927_v29  ;;  %v824_v44 = vmul.f32 %v822_v0, %v1924_v28 }
  0x8e   :  { %v834_v18 = vrot.slane %v1937_v33, %v2248_v22  ;;  %v2367_v12 = vmul.f32 %v901_v46, %v2345_v15  ;;  %v748_v16 = vrot.slane %v1968_v52, %v2236_v53  ;;  %v727_v24 = vadd.f32 %v725_v19, %v715_v3 }
  0x8f   :  { %v2372_v60 = vmul.f32 %v905_v45, %v2357_v27  ;;  %v917_v2 = vrot.slane %v2357_v27, %v1927_v29  ;;  %v918_v14 = vmul.f32 %v913_v11, %v2345_v15  ;;  %v728_v35 = vadd.f32 %v726_v8, %v716_v7 }
  0x90   :  { %v737_v40 = vmul.f32 %v732_v17, %v1935_v32  ;;  %v738_v0 = vmul.f32 %v736_v30, %v1937_v33  ;;  %v825_v5 = vadd.f32 %v823_v49, %v813_v37  ;;  %v835_v46 = vmul.f32 %v830_v63, %v1935_v32 }
  0x91   :  { %v842_v13 = vrot.slane %v1959_v47, %v2248_v22  ;;  %v919_v45 = vmul.f32 %v917_v2, %v2357_v27  ;;  %v756_v50 = vrot.slane %v1982_v62, %v2236_v53  ;;  %v826_v29 = vadd.f32 %v824_v44, %v814_v54 }
  0x92   :  { %v836_v11 = vmul.f32 %v834_v18, %v1937_v33  ;;  %v846_v19 = vrot.slane %v1968_v52, %v2248_v22  ;;  %v749_v8 = vmul.f32 %v744_v42, %v1959_v47  ;;  %v750_v17 = vmul.f32 %v748_v16, %v1968_v52 }
  0x93   :  { %v760_v30 = vrot.slane %v1994_v10, %v2236_v53  ;;  %v2393_v3 = vsub.f32 %v2144_v58, %v918_v14  ;;  %v739_v7 = vadd.f32 %v737_v40, %v727_v24  ;;  %v740_v49 = vadd.f32 %v738_v0, %v728_v35 }
  0x94   :  { %v2864_v63 = vmax.f32 %v2113_v21, 1e-30  ;;  %v2398_v37 = vsub.f32 %v2147_v59, %v919_v45  ;;  %v837_v54 = vadd.f32 %v835_v46, %v825_v5  ;;  %v847_v44 = vmul.f32 %v842_v13, %v1959_v47 }
  0x95   :  { %v854_v42 = vrot.slane %v1982_v62, %v2248_v22  ;;  %v2865_v18 = vmax.f32 %v2127_v36, 1e-30  ;;  %v2866_v58 = vrot.slane %v1914_v20, %v1992_v9  ;;  %v838_v21 = vadd.f32 %v836_v11, %v826_v29 }
  0x96   :  { %1659 = vlog2.f32 %v2864_v63  ;;  %v848_v2 = vmul.f32 %v846_v19, %v1968_v52  ;;  %v858_v59 = vrot.slane %v1994_v10, %v2248_v22  ;;  %v665_v13 = vadd.f32 %v2308_v56, %v2305_v38 }
  0x97   :  { %1661 = vlog2.f32 %v2865_v18  ;;  %v2409_v16 = vmul.f32 %v2866_v58, %v1914_v20  ;;  %v2867_v14 = vmov 0.0   ;;  %v761_v24 = vmul.f32 %v756_v50, %v1982_v62 }
  0x98   :  { %v668_v36 = vsel %vm667_vm4, 1e-06, %v2867_v14  ;;  %v994_v35 = vmax.f32 %v2393_v3, 1e-30  ;;  %v751_v40 = vadd.f32 %v749_v8, %v739_v7  ;;  %v752_v20 = vadd.f32 %v750_v17, %v740_v49 }
  0x99   :  { %v762_v29 = vmul.f32 %v760_v30, %v1994_v10  ;;  %v995_v0 = vmax.f32 %v2398_v37, 1e-30  ;;  %v666_v5 = vadd.f32 %v2311_v4, %v2315_v57  ;;  %v849_v46 = vadd.f32 %v847_v44, %v837_v54 }
  0x9a   :  { %v859_v38 = vmul.f32 %v854_v42, %v1982_v62  ;;  %1663 = vrsqrt.f32 %v994_v35  ;;  %vm765_vm5 = vcmp.eq.s32.totalorder %v1879_v1, 6  ;;  %v850_v56 = vadd.f32 %v848_v2, %v838_v21 }
  0x9b   :  { %v860_v50 = vmul.f32 %v858_v59, %v1994_v10  ;;  %1665 = vrsqrt.f32 %v995_v0  ;;  %vm863_vm6 = vcmp.eq.s32.totalorder %v1879_v1, 7  ;;  %v925_v45 = vrot.slane %v2345_v15, %v1953_v43 }
  0x9c   :  { %v929_v11 = vrot.slane %v2357_v27, %v1953_v43  ;;  %1667 = vlog2.f32 %v994_v35  ;;  %v2435_v4 = vadd.f32 %v2227_v55, %v2201_v25  ;;  %v763_v57 = vadd.f32 %v761_v24, %v751_v40 }
  0x9d   :  { %v764_v19 = vadd.f32 %v762_v29, %v752_v20  ;;  %1669 = vlog2.f32 %v995_v0  ;;  %v524_v8 = vrot.slane %v1919_v23, %v1992_v9  ;;  %v528_v17 = vrot.slane %v1924_v28, %v1992_v9 }
  0x9e   :  { %v766_v30 = vsel %vm765_vm5, 1e-06, %v2867_v14  ;;  %v861_v7 = vadd.f32 %v859_v38, %v849_v46  ;;  %v2444_v63 = vadd.f32 %v2230_v48, %v2238_v51  ;;  %v2446_v54 = vadd.f32 %v668_v36, %v665_v13 }
  0x9f   :  { %v862_v25 = vadd.f32 %v860_v50, %v850_v56  ;;  %v864_v55 = vsel %vm863_vm6, 1e-06, %v2867_v14  ;;  %v2451_v42 = vadd.f32 %v668_v36, %v666_v5  ;;  %v2454_v18 = vmul.f32 %v925_v45, %v2345_v15 }
  0xa0   :  { %v1660_v49 = vpop.eup %1659  ;;  %v2457_v58 = vmul.f32 %v929_v11, %v2357_v27  ;;  %v961_v48 = vrot.slane %v2345_v15, %v2052_v31  ;;  %v2461_v51 = vadd.f32 %v766_v30, %v763_v57  ;;  %v2463_v21 = vadd.f32 %v766_v30, %v764_v19 }
  0xa1   :  { %v1662_v44 = vpop.eup %1661  ;;  %v908_v2 = vsub.f32 %v1980_v61, %v2367_v12  ;;  %vm998_vm7 = vcmp.ge.s32.totalorder %v1879_v1, 1  ;;  %v2468_v59 = vadd.f32 %v864_v55, %v861_v7  ;;  %v909_v13 = vsub.f32 %v2045_v26, %v2372_v60 }
  0xa2   :  { %v965_v36 = vrot.slane %v2357_v27, %v2052_v31  ;;  %v973_v24 = vrot.slane %v2345_v15, %v2236_v53  ;;  %v2476_v35 = vadd.f32 %v864_v55, %v862_v25  ;;  %v887_v40 = vmul.f32 0.6931472, %v1660_v49 }
  0xa3   :  { %v889_v20 = vmul.f32 0.6931472, %v1662_v44  ;;  %v894_v61 = vmul.f32 %v2336_v34, %v2336_v34  ;;  %v895_v29 = vmul.f32 %v2348_v6, %v2348_v6  ;;  %v932_v26 = vsub.f32 %v2179_v39, %v2454_v18  ;;  %v2868_v34 = vld [vmem:[#allocation12_spill] sm:$0xff] }
  0xa4   :  { %v1664_v12 = vpop.eup %1663  ;;  %v933_v60 = vsub.f32 %v2182_v41, %v2457_v58  ;;  %v966_v0 = vmul.f32 %v961_v48, %v2345_v15  ;;  %v977_v46 = vrot.slane %v2357_v27, %v2236_v53  ;;  %v985_v38 = vrot.slane %v2345_v15, %v2248_v22 }
  0xa5   :  { %v1666_v5 = vpop.eup %1665  ;;  %v1002_v56 = vrot.slane %v1664_v12, %v2868_v34  ;;  %v1025_v50 = vmul.f32 %v1664_v12, %v908_v2  ;;  %v967_v6 = vmul.f32 %v965_v36, %v2357_v27  ;;  %v978_v39 = vmul.f32 %v973_v24, %v2345_v15 }
  0xa6   :  { %v1668_v45 = vpop.eup %1667  ;;  %v1006_v11 = vrot.slane %v1666_v5, %v2868_v34  ;;  %v1026_v41 = vmul.f32 %v1666_v5, %v909_v13  ;;  %v989_v58 = vrot.slane %v2357_v27, %v2248_v22  ;;  %vm1125_vm8 = vcmp.ge.s32.totalorder %v1879_v1, 2 }
  0xa7   :  { %v1670_v57 = vpop.eup %1669  ;;  %v1007_v19 = vmul.f32 %v1002_v56, %v2393_v3  ;;  %v1014_v30 = vmul.f32 0.6931472, %v1668_v45  ;;  %v1027_v7 = vmul.f32 %v1025_v50, %v1025_v50  ;;  %v1040_v49 = vrot.slane %v1025_v50, %v2868_v34 }
  0xa8   :  { %v1008_v25 = vmul.f32 %v1006_v11, %v2398_v37  ;;  %v1016_v55 = vmul.f32 0.6931472, %v1670_v57  ;;  %v1028_v44 = vmul.f32 %v1026_v41, %v1026_v41  ;;  %v1044_v18 = vrot.slane %v1026_v41, %v2868_v34 }
  0xa9   :  { %v2503_v48 = vsel %vm998_vm7, %v1007_v19, 0.0  ;;  %v1019_v36 = vrot.slane %v1014_v30, 1  ;;  %v1031_v24 = vrot.slane %v1027_v7, 1  ;;  %v968_v30 = vsub.f32 %v2446_v54, %v966_v0 }
  0xaa   :  { %v2507_v3 = vsel %vm998_vm7, %v1008_v25, 0.0  ;;  %v1020_v12 = vrot.slane %v1016_v55, 1  ;;  %v1032_v5 = vrot.slane %v1028_v44, 1  ;;  %v1045_v37 = vmul.f32 %v1040_v49, %v2503_v48  ;;  %v2869_v25 = vld [vmem:[#allocation18_spill] sm:$0xff] }
  0xab   :  { %v2510_v56 = vadd.f32 %v1019_v36, %v887_v40  ;;  %v2512_v34 = vadd.f32 %v1031_v24, %v894_v61  ;;  %v1046_v50 = vmul.f32 %v1044_v18, %v2507_v3  ;;  %v1052_v45 = vrot.slane %v2503_v48, %v1953_v43 }
  0xac   :  { %v2517_v11 = vadd.f32 %v1020_v12, %v889_v20  ;;  %v2519_v41 = vadd.f32 %v1032_v5, %v895_v29  ;;  %v2521_v57 = vsub.f32 %v908_v2, %v1045_v37  ;;  %v1056_v19 = vrot.slane %v2507_v3, %v1953_v43 }
  0xad   :  { %v979_v40 = vmul.f32 %v977_v46, %v2357_v27  ;;  %v2527_v61 = vsub.f32 %v909_v13, %v1046_v50  ;;  %v1057_v7 = vmul.f32 %v1052_v45, %v2503_v48  ;;  %v990_v49 = vmul.f32 %v985_v38, %v2345_v15 }
  0xae   :  { %v991_v20 = vmul.f32 %v989_v58, %v2357_v27  ;;  %v1058_v29 = vmul.f32 %v1056_v19, %v2507_v3  ;;  %v1088_v2 = vrot.slane %v2503_v48, %v2052_v31  ;;  %v508_v55 = vadd.f32 %v2869_v25, %v2435_v4 }
  0xaf   :  { %v536_v54 = vrot.slane %v1935_v32, %v1992_v9  ;;  %v969_v13 = vsub.f32 %v2451_v42, %v967_v6  ;;  %v1092_v0 = vrot.slane %v2507_v3, %v2052_v31  ;;  %v529_v46 = vmul.f32 %v524_v8, %v1919_v23 }
  0xb0   :  { %v2546_v38 = vsub.f32 %v932_v26, %v1057_v7  ;;  %v2548_v44 = vsub.f32 %v933_v60, %v1058_v29  ;;  %v1093_v18 = vmul.f32 %v1088_v2, %v2503_v48  ;;  %v980_v4 = vsub.f32 %v2461_v51, %v978_v39  ;;  %v2870_v39 = vld [vmem:[#allocation19_spill] sm:$0xff] }
  0xb1   :  { %v981_v58 = vsub.f32 %v2463_v21, %v979_v40  ;;  %v1094_v42 = vmul.f32 %v1092_v0, %v2507_v3  ;;  %v1100_v6 = vrot.slane %v2503_v48, %v2236_v53  ;;  %v992_v36 = vsub.f32 %v2468_v59, %v990_v49 }
  0xb2   :  { %v993_v24 = vsub.f32 %v2476_v35, %v991_v20  ;;  %v2558_v23 = vsub.f32 %v968_v30, %v1093_v18  ;;  %v1104_v8 = vrot.slane %v2507_v3, %v2236_v53  ;;  %v1112_v21 = vrot.slane %v2503_v48, %v2248_v22  ;;  %v2871_v30 = vld [vmem:[#allocation13_spill] sm:$0xff] }
  0xb3   :  { %v2562_v26 = vsub.f32 %v969_v13, %v1094_v42  ;;  %v1105_v51 = vmul.f32 %v1100_v6, %v2503_v48  ;;  %v1116_v60 = vrot.slane %v2507_v3, %v2248_v22  ;;  %v519_v59 = vadd.f32 %v2870_v39, %v2444_v63 }
  0xb4   :  { %v1106_v35 = vmul.f32 %v1104_v8, %v2507_v3  ;;  %v1121_v12 = vmax.f32 %v2546_v38, 1e-30  ;;  %v1122_v5 = vmax.f32 %v2548_v44, 1e-30  ;;  %v540_v37 = vrot.slane %v1937_v33, %v1992_v9 }
  0xb5   :  { %v2576_v50 = vsub.f32 %v980_v4, %v1105_v51  ;;  %v1117_v45 = vmul.f32 %v1112_v21, %v2503_v48  ;;  %v1118_v19 = vmul.f32 %v1116_v60, %v2507_v3  ;;  %v530_v63 = vmul.f32 %v528_v17, %v1924_v28  ;;  %v2872_v28 = vld [vmem:[#allocation16_spill] sm:$0xff]  ;;  %v2873_v17 = vld [vmem:[#allocation15_spill] sm:$0xff]  ;;  %v2874_v4 = vld [vmem:[#allocation17_spill] sm:$0xff] }
  0xb6   :  { %v937_v40 = vrot.slane %v2345_v15, %v2871_v30  ;;  %v2586_v7 = vsub.f32 %v981_v58, %v1106_v35  ;;  %1671 = vrsqrt.f32 %v1121_v12  ;;  %v548_v49 = vrot.slane %v1959_v47, %v1992_v9  ;;  %v2875_v58 = vld [vmem:[#allocation14_spill] sm:$0xff] }
  0xb7   :  { %v2590_v20 = vsub.f32 %v992_v36, %v1117_v45  ;;  %v2592_v29 = vsub.f32 %v993_v24, %v1118_v19  ;;  %1673 = vrsqrt.f32 %v1122_v5  ;;  %v520_v2 = vadd.f32 %v2409_v16, %v508_v55 }
  0xb8   :  { %v531_v25 = vadd.f32 %v529_v46, %v519_v59  ;;  %v541_v13 = vmul.f32 %v536_v54, %v1935_v32  ;;  %1675 = vlog2.f32 %v1121_v12  ;;  %v470_v0 = vadd.f32 %v2873_v17, %v2872_v28 }
  0xb9   :  { %v941_v18 = vrot.slane %v2357_v27, %v2871_v30  ;;  %1677 = vlog2.f32 %v1122_v5  ;;  %v473_v42 = vadd.f32 %v2875_v58, %v2874_v4  ;;  %v942_v6 = vmul.f32 %v937_v40, %v2345_v15 }
  0xba   :  { %v1064_v36 = vrot.slane %v2503_v48, %v2871_v30  ;;  %v542_v16 = vmul.f32 %v540_v37, %v1937_v33  ;;  %v552_v32 = vrot.slane %v1968_v52, %v1992_v9  ;;  %v532_v55 = vadd.f32 %v530_v63, %v520_v2 }
  0xbb   :  { %v543_v54 = vadd.f32 %v541_v13, %v531_v25  ;;  %v553_v46 = vmul.f32 %v548_v49, %v1959_v47  ;;  %v560_v24 = vrot.slane %v1982_v62, %v1992_v9  ;;  %v474_v8 = vadd.f32 %v2875_v58, %v470_v0 }
  0xbc   :  { %v943_v51 = vmul.f32 %v941_v18, %v2357_v27  ;;  %v1068_v21 = vrot.slane %v2507_v3, %v2871_v30  ;;  %v944_v60 = vsub.f32 %v473_v42, %v942_v6  ;;  %v1069_v33 = vmul.f32 %v1064_v36, %v2503_v48 }
  0xbd   :  { %v564_v39 = vrot.slane %v1994_v10, %v1992_v9  ;;  %v544_v35 = vadd.f32 %v542_v16, %v532_v55  ;;  %v554_v47 = vmul.f32 %v552_v32, %v1968_v52  ;;  %v555_v12 = vadd.f32 %v553_v46, %v543_v54 }
  0xbe   :  { %v565_v5 = vmul.f32 %v560_v24, %v1982_v62  ;;  %v945_v45 = vsub.f32 %v474_v8, %v943_v51  ;;  %v1070_v19 = vmul.f32 %v1068_v21, %v2507_v3  ;;  %v1071_v2 = vsub.f32 %v944_v60, %v1069_v33 }
  0xbf   :  { %vm569_vm9 = vcmp.eq.s32.totalorder %v1879_v1, 4  ;;  %vm1240_vm10 = vcmp.ge.s32.totalorder %v1879_v1, 3  ;;  %vm1343_vm11 = vcmp.ge.s32.totalorder %v1879_v1, 4  ;;  %vm1434_vm12 = vcmp.ge.s32.totalorder %v1879_v1, 5 }
  0xc0   :  { %v1672_v59 = vpop.eup %1671  ;;  %v1072_v42 = vsub.f32 %v945_v45, %v1070_v19  ;;  %v556_v45 = vadd.f32 %v554_v47, %v544_v35  ;;  %v567_v19 = vadd.f32 %v565_v5, %v555_v12  ;;  %vm1513_vm13 = vcmp.ge.s32.totalorder %v1879_v1, 6 }
  0xc1   :  { %v1674_v37 = vpop.eup %1673  ;;  %v1129_v63 = vrot.slane %v1672_v59, %v1953_v43  ;;  %v1152_v40 = vmul.f32 %v1672_v59, %v2521_v57 }
  0xc2   :  { %v1676_v49 = vpop.eup %1675  ;;  %v1133_v10 = vrot.slane %v1674_v37, %v1953_v43  ;;  %v1153_v25 = vmul.f32 %v1674_v37, %v2527_v61 }
  0xc3   :  { %v1678_v52 = vpop.eup %1677  ;;  %v1134_v13 = vmul.f32 %v1129_v63, %v2546_v38  ;;  %v1141_v62 = vmul.f32 0.6931472, %v1676_v49  ;;  %v1154_v28 = vmul.f32 %v1152_v40, %v1152_v40  ;;  %v1167_v17 = vrot.slane %v1152_v40, %v1953_v43 }
  0xc4   :  { %v1135_v0 = vmul.f32 %v1133_v10, %v2548_v44  ;;  %v1143_v18 = vmul.f32 0.6931472, %v1678_v52  ;;  %v1155_v4 = vmul.f32 %v1153_v25, %v1153_v25  ;;  %v1171_v58 = vrot.slane %v1153_v25, %v1953_v43 }
  0xc5   :  { %v2632_v6 = vsel %vm1125_vm8, %v1134_v13, 0.0  ;;  %v1146_v36 = vrot.slane %v1141_v62, 2  ;;  %v1158_v16 = vrot.slane %v1154_v28, 2  ;;  %v570_v40 = vsel %vm569_vm9, 1e-06, %v2867_v14 }
  0xc6   :  { %v2636_v38 = vsel %vm1125_vm8, %v1135_v0, 0.0  ;;  %v1147_v32 = vrot.slane %v1143_v18, 2  ;;  %v1159_v55 = vrot.slane %v1155_v4, 2  ;;  %v1172_v54 = vmul.f32 %v1167_v17, %v2632_v6 }
  0xc7   :  { %v2640_v44 = vadd.f32 %v1146_v36, %v2510_v56  ;;  %v2643_v43 = vadd.f32 %v1158_v16, %v2512_v34  ;;  %v1173_v46 = vmul.f32 %v1171_v58, %v2636_v38  ;;  %v1179_v24 = vrot.slane %v2632_v6, %v2871_v30 }
  0xc8   :  { %v2649_v8 = vadd.f32 %v1147_v32, %v2517_v11  ;;  %v2652_v51 = vadd.f32 %v1159_v55, %v2519_v41  ;;  %v2655_v21 = vsub.f32 %v2521_v57, %v1172_v54  ;;  %v1183_v56 = vrot.slane %v2636_v38, %v2871_v30  ;;  %v1719_v41 = vld [vmem:[#allocation7 + $0x78] sm:$0xff] }
  0xc9   :  { %v2660_v34 = vsub.f32 %v2527_v61, %v1173_v46  ;;  %v1184_v60 = vmul.f32 %v1179_v24, %v2632_v6  ;;  %v1215_v11 = vrot.slane %v2632_v6, %v2236_v53  ;;  %v566_v59 = vmul.f32 %v1719_v41, %v564_v39 }
  0xca   :  { %v1185_v33 = vmul.f32 %v1183_v56, %v2636_v38  ;;  %v1219_v57 = vrot.slane %v2636_v38, %v2236_v53  ;;  %v949_v49 = vrot.slane %v2345_v15, %v1992_v9  ;;  %v1227_v39 = vrot.slane %v2632_v6, %v2248_v22 }
  0xcb   :  { %v1186_v37 = vsub.f32 %v1071_v2, %v1184_v60  ;;  %v2670_v61 = vmul.f32 %v1215_v11, %v2632_v6  ;;  %v1231_v35 = vrot.slane %v2636_v38, %v2248_v22  ;;  %v568_v25 = vadd.f32 %v566_v59, %v556_v45 }
  0xcc   :  { %v1187_v63 = vsub.f32 %v1072_v42, %v1185_v33  ;;  %v2676_v10 = vmul.f32 %v1219_v57, %v2636_v38  ;;  %v2687_v14 = vmul.f32 %v1227_v39, %v2632_v6  ;;  %v571_v52 = vadd.f32 %v570_v40, %v567_v19 }
  0xcd   :  { %v1222_v2 = vsub.f32 %v2576_v50, %v2670_v61  ;;  %v1236_v12 = vmax.f32 %v1186_v37, 1e-30  ;;  %v953_v13 = vrot.slane %v2357_v27, %v1992_v9  ;;  %v2692_v62 = vmul.f32 %v1231_v35, %v2636_v38 }
  0xce   :  { %v1223_v47 = vsub.f32 %v2586_v7, %v2676_v10  ;;  %v1237_v5 = vmax.f32 %v1187_v63, 1e-30  ;;  %v954_v28 = vmul.f32 %v949_v49, %v2345_v15  ;;  %v1076_v17 = vrot.slane %v2503_v48, %v1992_v9 }
  0xcf   :  { %v1234_v0 = vsub.f32 %v2590_v20, %v2687_v14  ;;  %1679 = vrsqrt.f32 %v1236_v12  ;;  %v1235_v18 = vsub.f32 %v2592_v29, %v2692_v62  ;;  %v572_v4 = vadd.f32 %v570_v40, %v568_v25 }
  0xd0   :  { %1681 = vrsqrt.f32 %v1237_v5  ;;  %v955_v58 = vmul.f32 %v953_v13, %v2357_v27  ;;  %v1080_v42 = vrot.slane %v2507_v3, %v1992_v9  ;;  %v956_v15 = vsub.f32 %v571_v52, %v954_v28 }
  0xd1   :  { %1683 = vlog2.f32 %v1236_v12  ;;  %v1081_v36 = vmul.f32 %v1076_v17, %v2503_v48  ;;  %v1191_v16 = vrot.slane %v2632_v6, %v1992_v9  ;;  %v1195_v54 = vrot.slane %v2636_v38, %v1992_v9 }
  0xd2   :  { %1685 = vlog2.f32 %v1237_v5  ;;  %v957_v32 = vsub.f32 %v572_v4, %v955_v58  ;;  %v1082_v55 = vmul.f32 %v1080_v42, %v2507_v3 }
  0xd3   :  { %v1083_v46 = vsub.f32 %v956_v15, %v1081_v36  ;;  %v1196_v24 = vmul.f32 %v1191_v16, %v2632_v6  ;;  %v1197_v33 = vmul.f32 %v1195_v54, %v2636_v38 }
  0xd4   :  { %v1084_v60 = vsub.f32 %v957_v32, %v1082_v55 }
  0xd5   :  { %v1198_v59 = vsub.f32 %v1083_v46, %v1196_v24 }
  0xd6   :  { %v1199_v52 = vsub.f32 %v1084_v60, %v1197_v33 }
  0xd9   :  { %v1680_v27 = vpop.eup %1679 }
  0xda   :  { %v1682_v56 = vpop.eup %1681  ;;  %v1244_v11 = vrot.slane %v1680_v27, %v2871_v30  ;;  %v1267_v48 = vmul.f32 %v1680_v27, %v2655_v21 }
  0xdb   :  { %v1684_v41 = vpop.eup %1683  ;;  %v1248_v3 = vrot.slane %v1682_v56, %v2871_v30  ;;  %v1268_v57 = vmul.f32 %v1682_v56, %v2660_v34 }
  0xdc   :  { %v1686_v45 = vpop.eup %1685  ;;  %v1249_v19 = vmul.f32 %v1244_v11, %v1186_v37  ;;  %v1256_v40 = vmul.f32 0.6931472, %v1684_v41  ;;  %v1269_v49 = vmul.f32 %v1267_v48, %v1267_v48  ;;  %v1282_v39 = vrot.slane %v1267_v48, %v2871_v30 }
  0xdd   :  { %v1250_v35 = vmul.f32 %v1248_v3, %v1187_v63  ;;  %v1258_v12 = vmul.f32 0.6931472, %v1686_v45  ;;  %v1270_v5 = vmul.f32 %v1268_v57, %v1268_v57  ;;  %v1286_v25 = vrot.slane %v1268_v57, %v2871_v30 }
  0xde   :  { %v1253_v13 = vsel %vm1240_vm10, %v1249_v19, 0.0  ;;  %v1261_v28 = vrot.slane %v1256_v40, 3  ;;  %v1273_v17 = vrot.slane %v1269_v49, 3  ;;  %v1207_v48 = vrot.slane %v2636_v38, %v2052_v31 }
  0xdf   :  { %v1254_v4 = vsel %vm1240_vm10, %v1250_v35, 0.0  ;;  %v1262_v58 = vrot.slane %v1258_v12, 3  ;;  %v1274_v37 = vrot.slane %v1270_v5, 3  ;;  %v1287_v42 = vmul.f32 %v1282_v39, %v1253_v13 }
  0xe0   :  { %v2724_v15 = vadd.f32 %v1261_v28, %v2640_v44  ;;  %v2727_v63 = vadd.f32 %v1273_v17, %v2643_v43  ;;  %v1288_v36 = vmul.f32 %v1286_v25, %v1254_v4  ;;  %v1294_v30 = vrot.slane %v1253_v13, %v1992_v9 }
  0xe1   :  { %v2731_v16 = vadd.f32 %v1262_v58, %v2649_v8  ;;  %v2734_v32 = vadd.f32 %v1274_v37, %v2652_v51  ;;  %v2737_v55 = vsub.f32 %v2655_v21, %v1287_v42  ;;  %v1298_v54 = vrot.slane %v1254_v4, %v1992_v9 }
  0xe2   :  { %v2741_v44 = vsub.f32 %v2660_v34, %v1288_v36  ;;  %v1299_v46 = vmul.f32 %v1294_v30, %v1253_v13  ;;  %v1330_v24 = vrot.slane %v1253_v13, %v2248_v22  ;;  %v1334_v56 = vrot.slane %v1254_v4, %v2248_v22 }
  0xe3   :  { %v1300_v43 = vmul.f32 %v1298_v54, %v1254_v4  ;;  %v1203_v21 = vrot.slane %v2632_v6, %v2052_v31  ;;  %v1306_v3 = vrot.slane %v1253_v13, %v2052_v31  ;;  %v1209_v20 = vmul.f32 %v1207_v48, %v2636_v38 }
  0xe4   :  { %v1301_v27 = vsub.f32 %v1198_v59, %v1299_v46  ;;  %v1335_v60 = vmul.f32 %v1330_v24, %v1253_v13  ;;  %v1336_v33 = vmul.f32 %v1334_v56, %v1254_v4  ;;  %v1310_v14 = vrot.slane %v1254_v4, %v2052_v31 }
  0xe5   :  { %v1302_v8 = vsub.f32 %v1199_v52, %v1300_v43  ;;  %v1208_v59 = vmul.f32 %v1203_v21, %v2632_v6  ;;  %v1311_v45 = vmul.f32 %v1306_v3, %v1253_v13  ;;  %v1322_v29 = vrot.slane %v1254_v4, %v2236_v53 }
  0xe6   :  { %v1339_v51 = vmax.f32 %v1301_v27, 1e-30  ;;  %v2750_v11 = vsub.f32 %v1234_v0, %v1335_v60  ;;  %v2757_v41 = vsub.f32 %v1235_v18, %v1336_v33  ;;  %v1318_v0 = vrot.slane %v1253_v13, %v2236_v53 }
  0xe7   :  { %v1340_v34 = vmax.f32 %v1302_v8, 1e-30  ;;  %v1210_v57 = vsub.f32 %v2558_v23, %v1208_v59  ;;  %v1211_v62 = vsub.f32 %v2562_v26, %v1209_v20  ;;  %v1312_v18 = vmul.f32 %v1310_v14, %v1254_v4 }
  0xe8   :  { %1687 = vrsqrt.f32 %v1339_v51  ;;  %v1323_v19 = vmul.f32 %v1318_v0, %v1253_v13  ;;  %v1324_v39 = vmul.f32 %v1322_v29, %v1254_v4 }
  0xe9   :  { %1689 = vrsqrt.f32 %v1340_v34  ;;  %v1313_v49 = vsub.f32 %v1210_v57, %v1311_v45  ;;  %v1314_v5 = vsub.f32 %v1211_v62, %v1312_v18 }
  0xea   :  { %1691 = vlog2.f32 %v1339_v51  ;;  %v2773_v23 = vsub.f32 %v1222_v2, %v1323_v19  ;;  %v2782_v50 = vsub.f32 %v1223_v47, %v1324_v39 }
  0xeb   :  { %1693 = vlog2.f32 %v1340_v34 }
  0xf2   :  { %v1688_v40 = vpop.eup %1687 }
  0xf3   :  { %v1690_v6 = vpop.eup %1689  ;;  %v1347_v38 = vrot.slane %v1688_v40, %v1992_v9  ;;  %v1370_v35 = vmul.f32 %v1688_v40, %v2737_v55 }
  0xf4   :  { %v1692_v12 = vpop.eup %1691  ;;  %v1351_v26 = vrot.slane %v1690_v6, %v1992_v9  ;;  %v1371_v25 = vmul.f32 %v1690_v6, %v2741_v44 }
  0xf5   :  { %v1694_v52 = vpop.eup %1693  ;;  %v1352_v13 = vmul.f32 %v1347_v38, %v1301_v27  ;;  %v1359_v28 = vmul.f32 0.6931472, %v1692_v12  ;;  %v1372_v17 = vmul.f32 %v1370_v35, %v1370_v35  ;;  %v1385_v4 = vrot.slane %v1370_v35, %v1992_v9 }
  0xf6   :  { %v1353_v58 = vmul.f32 %v1351_v26, %v1302_v8  ;;  %v1361_v37 = vmul.f32 0.6931472, %v1694_v52  ;;  %v1373_v42 = vmul.f32 %v1371_v25, %v1371_v25  ;;  %v1389_v36 = vrot.slane %v1371_v25, %v1992_v9 }
  0xf7   :  { %v1356_v61 = vsel %vm1343_vm11, %v1352_v13, 0.0  ;;  %v1364_v2 = vrot.slane %v1359_v28, 4  ;;  %v1376_v30 = vrot.slane %v1372_v17, 4 }
  0xf8   :  { %v1357_v54 = vsel %vm1343_vm11, %v1353_v58, 0.0  ;;  %v1365_v46 = vrot.slane %v1361_v37, 4  ;;  %v1377_v43 = vrot.slane %v1373_v42, 4  ;;  %v1390_v24 = vmul.f32 %v1385_v4, %v1356_v61 }
  0xf9   :  { %v1368_v27 = vadd.f32 %v1364_v2, %v2724_v15  ;;  %v1380_v9 = vadd.f32 %v1376_v30, %v2727_v63  ;;  %v1391_v56 = vmul.f32 %v1389_v36, %v1357_v54  ;;  %v1397_v7 = vrot.slane %v1356_v61, %v2052_v31 }
  0xfa   :  { %v1369_v10 = vadd.f32 %v1365_v46, %v2731_v16  ;;  %v1381_v47 = vadd.f32 %v1377_v43, %v2734_v32  ;;  %v1392_v8 = vsub.f32 %v2737_v55, %v1390_v24  ;;  %v1401_v60 = vrot.slane %v1357_v54, %v2052_v31 }
  0xfb   :  { %v1393_v33 = vsub.f32 %v2741_v44, %v1391_v56  ;;  %v1402_v51 = vmul.f32 %v1397_v7, %v1356_v61  ;;  %v1409_v21 = vrot.slane %v1356_v61, %v2236_v53  ;;  %v1413_v15 = vrot.slane %v1357_v54, %v2236_v53 }
  0xfc   :  { %v1403_v34 = vmul.f32 %v1401_v60, %v1357_v54  ;;  %v1421_v63 = vrot.slane %v1356_v61, %v2248_v22  ;;  %v1425_v48 = vrot.slane %v1357_v54, %v2248_v22 }
  0xfd   :  { %v1404_v59 = vsub.f32 %v1313_v49, %v1402_v51  ;;  %v1414_v16 = vmul.f32 %v1409_v21, %v1356_v61  ;;  %v1415_v3 = vmul.f32 %v1413_v15, %v1357_v54 }
  0xfe   :  { %v1405_v32 = vsub.f32 %v1314_v5, %v1403_v34  ;;  %v1426_v20 = vmul.f32 %v1421_v63, %v1356_v61  ;;  %v1427_v55 = vmul.f32 %v1425_v48, %v1357_v54 }
  0xff   :  { %v1416_v14 = vsub.f32 %v2773_v23, %v1414_v16  ;;  %v1417_v44 = vsub.f32 %v2782_v50, %v1415_v3  ;;  %v1430_v0 = vmax.f32 %v1404_v59, 1e-30 }
 0x100   :  { %v1428_v57 = vsub.f32 %v2750_v11, %v1426_v20  ;;  %v1429_v45 = vsub.f32 %v2757_v41, %v1427_v55  ;;  %v1431_v29 = vmax.f32 %v1405_v32, 1e-30 }
 0x101   :  { %1695 = vrsqrt.f32 %v1430_v0 }
 0x102   :  { %1697 = vrsqrt.f32 %v1431_v29 }
 0x103   :  { %1699 = vlog2.f32 %v1430_v0 }
 0x104   :  { %1701 = vlog2.f32 %v1431_v29 }
 0x10b   :  { %v1696_v62 = vpop.eup %1695 }
 0x10c   :  { %v1698_v18 = vpop.eup %1697  ;;  %v1438_v19 = vrot.slane %v1696_v62, %v2052_v31  ;;  %v1461_v40 = vmul.f32 %v1696_v62, %v1392_v8 }
 0x10d   :  { %v1700_v6 = vpop.eup %1699  ;;  %v1442_v49 = vrot.slane %v1698_v18, %v2052_v31  ;;  %v1462_v39 = vmul.f32 %v1698_v18, %v1393_v33 }
 0x10e   :  { %v1702_v38 = vpop.eup %1701  ;;  %v1443_v11 = vmul.f32 %v1438_v19, %v1404_v59  ;;  %v1450_v35 = vmul.f32 0.6931472, %v1700_v6  ;;  %v1463_v41 = vmul.f32 %v1461_v40, %v1461_v40  ;;  %v1476_v12 = vrot.slane %v1461_v40, %v2052_v31 }
 0x10f   :  { %v1444_v5 = vmul.f32 %v1442_v49, %v1405_v32  ;;  %v1452_v23 = vmul.f32 0.6931472, %v1702_v38  ;;  %v1464_v26 = vmul.f32 %v1462_v39, %v1462_v39  ;;  %v1480_v25 = vrot.slane %v1462_v39, %v2052_v31 }
 0x110   :  { %v1447_v52 = vsel %vm1434_vm12, %v1443_v11, 0.0  ;;  %v1455_v13 = vrot.slane %v1450_v35, 5  ;;  %v1467_v28 = vrot.slane %v1463_v41, 5 }
 0x111   :  { %v1448_v17 = vsel %vm1434_vm12, %v1444_v5, 0.0  ;;  %v1456_v4 = vrot.slane %v1452_v23, 5  ;;  %v1468_v58 = vrot.slane %v1464_v26, 5  ;;  %v1481_v37 = vmul.f32 %v1476_v12, %v1447_v52 }
 0x112   :  { %v1459_v42 = vadd.f32 %v1455_v13, %v1368_v27  ;;  %v1471_v36 = vadd.f32 %v1467_v28, %v1380_v9  ;;  %v1482_v50 = vmul.f32 %v1480_v25, %v1448_v17  ;;  %v1488_v61 = vrot.slane %v1447_v52, %v2236_v53 }
 0x113   :  { %v1460_v2 = vadd.f32 %v1456_v4, %v1369_v10  ;;  %v1472_v30 = vadd.f32 %v1468_v58, %v1381_v47  ;;  %v2810_v54 = vsub.f32 %v1392_v8, %v1481_v37  ;;  %v1492_v46 = vrot.slane %v1448_v17, %v2236_v53 }
 0x114   :  { %v2813_v43 = vsub.f32 %v1393_v33, %v1482_v50  ;;  %v1493_v31 = vmul.f32 %v1488_v61, %v1447_v52  ;;  %v1500_v24 = vrot.slane %v1447_v52, %v2248_v22  ;;  %v1504_v56 = vrot.slane %v1448_v17, %v2248_v22 }
 0x115   :  { %v1494_v7 = vmul.f32 %v1492_v46, %v1448_v17 }
 0x116   :  { %v1495_v60 = vsub.f32 %v1416_v14, %v1493_v31  ;;  %v1505_v27 = vmul.f32 %v1500_v24, %v1447_v52  ;;  %v1506_v9 = vmul.f32 %v1504_v56, %v1448_v17 }
 0x117   :  { %v1496_v51 = vsub.f32 %v1417_v44, %v1494_v7 }
 0x118   :  { %v1507_v21 = vsub.f32 %v1428_v57, %v1505_v27  ;;  %v1508_v15 = vsub.f32 %v1429_v45, %v1506_v9  ;;  %v1509_v10 = vmax.f32 %v1495_v60, 1e-30 }
 0x119   :  { %v1510_v47 = vmax.f32 %v1496_v51, 1e-30 }
 0x11a   :  { %1703 = vrsqrt.f32 %v1509_v10 }
 0x11b   :  { %1705 = vrsqrt.f32 %v1510_v47 }
 0x11c   :  { %1707 = vlog2.f32 %v1509_v10 }
 0x11d   :  { %1709 = vlog2.f32 %v1510_v47 }
 0x124   :  { %v1704_v8 = vpop.eup %1703 }
 0x125   :  { %v1706_v33 = vpop.eup %1705  ;;  %v1517_v34 = vrot.slane %v1704_v8, %v2236_v53  ;;  %v1540_v63 = vmul.f32 %v1704_v8, %v2810_v54 }
 0x126   :  { %v1708_v48 = vpop.eup %1707  ;;  %v1521_v59 = vrot.slane %v1706_v33, %v2236_v53  ;;  %v1541_v16 = vmul.f32 %v1706_v33, %v2813_v43 }
 0x127   :  { %v1710_v3 = vpop.eup %1709  ;;  %v1522_v32 = vmul.f32 %v1517_v34, %v1495_v60  ;;  %v1529_v20 = vmul.f32 0.6931472, %v1708_v48  ;;  %v1542_v55 = vmul.f32 %v1540_v63, %v1540_v63  ;;  %v1555_v14 = vrot.slane %v1540_v63, %v2236_v53 }
 0x128   :  { %v1523_v44 = vmul.f32 %v1521_v59, %v1496_v51  ;;  %v1531_v0 = vmul.f32 0.6931472, %v1710_v3  ;;  %v1543_v57 = vmul.f32 %v1541_v16, %v1541_v16  ;;  %v1559_v45 = vrot.slane %v1541_v16, %v2236_v53 }
 0x129   :  { %v1526_v29 = vsel %vm1513_vm13, %v1522_v32, 0.0  ;;  %v1534_v62 = vrot.slane %v1529_v20, 6  ;;  %v1546_v18 = vrot.slane %v1542_v55, 6  ;;  %v2876_v63 = vlaneseq }
 0x12a   :  { %v1527_v19 = vsel %vm1513_vm13, %v1523_v44, 0.0  ;;  %v1535_v40 = vrot.slane %v1531_v0, 6  ;;  %v1547_v6 = vrot.slane %v1543_v57, 6  ;;  %v1560_v49 = vmul.f32 %v1555_v14, %v1526_v29 }
 0x12b   :  { %v1538_v39 = vadd.f32 %v1534_v62, %v1459_v42  ;;  %v1550_v38 = vadd.f32 %v1546_v18, %v1471_v36  ;;  %v1561_v11 = vmul.f32 %v1559_v45, %v1527_v19  ;;  %v1567_v35 = vrot.slane %v1526_v29, %v2248_v22 }
 0x12c   :  { %v1539_v41 = vadd.f32 %v1535_v40, %v1460_v2  ;;  %v1551_v12 = vadd.f32 %v1547_v6, %v1472_v30  ;;  %v1562_v5 = vsub.f32 %v2810_v54, %v1560_v49  ;;  %v1571_v23 = vrot.slane %v1527_v19, %v2248_v22 }
 0x12d   :  { %v1563_v53 = vsub.f32 %v2813_v43, %v1561_v11  ;;  %v1572_v26 = vmul.f32 %v1567_v35, %v1526_v29  ;;  %v1820_v54 = vmov 1966171168   ;;  %vm1628_vm14 = vcmp.lt.s32.totalorder %v2876_v63, 256 }
 0x12e   :  { %v1573_v25 = vmul.f32 %v1571_v23, %v1527_v19  ;;  %v1612_v46 = vunpack.c.l.s4 %v1820_v54 }
 0x12f   :  { %v1574_v52 = vsub.f32 %v1507_v21, %v1572_v26 }
 0x130   :  { %v1575_v13 = vsub.f32 %v1508_v15, %v1573_v25  ;;  %v1613_v51 = vunpack.c.0.s8 %v1612_v46 }
 0x131   :  { %v1576_v28 = vmax.f32 %v1574_v52, 1e-30 }
 0x132   :  { %v1577_v17 = vmax.f32 %v1575_v13, 1e-30  ;;  %v1616_v8 = vsub.s32 %v1613_v51, %v1879_v1 }
 0x133   :  { %1711 = vrsqrt.f32 %v1576_v28 }
 0x134   :  { %1713 = vrsqrt.f32 %v1577_v17 }
 0x135   :  { %1715 = vlog2.f32 %v1576_v28 }
 0x136   :  { %1717 = vlog2.f32 %v1577_v17 }
 0x13d   :  { %v1712_v4 = vpop.eup %1711 }
 0x13e   :  { %v1714_v58 = vpop.eup %1713  ;;  %v1592_v37 = vmul.f32 %v1712_v4, %v1562_v5 }
 0x13f   :  { %v1716_v42 = vpop.eup %1715  ;;  %v1593_v36 = vmul.f32 %v1714_v58, %v1563_v53 }
 0x140   :  { %v1718_v50 = vpop.eup %1717  ;;  %v1581_v61 = vmul.f32 0.6931472, %v1716_v42  ;;  %v1594_v22 = vmul.f32 %v1592_v37, %v1592_v37 }
 0x141   :  { %v1583_v2 = vmul.f32 0.6931472, %v1718_v50  ;;  %v1595_v30 = vmul.f32 %v1593_v36, %v1593_v36 }
 0x142   :  { %v1586_v43 = vrot.slane %v1581_v61, 7  ;;  %v1598_v31 = vrot.slane %v1594_v22, 7 }
 0x143   :  { %v1587_v24 = vrot.slane %v1583_v2, 7  ;;  %v1599_v56 = vrot.slane %v1595_v30, 7 }
 0x144   :  { %v1590_v7 = vadd.f32 %v1586_v43, %v1538_v39  ;;  %v1602_v60 = vadd.f32 %v1598_v31, %v1550_v38 }
 0x145   :  { %v1591_v27 = vadd.f32 %v1587_v24, %v1539_v41  ;;  %v1603_v9 = vadd.f32 %v1599_v56, %v1551_v12 }
 0x146   :  { %v1604_v21 = vadd.f32 %v1602_v60, %v1590_v7 }
 0x147   :  { %v1605_v15 = vadd.f32 %v1603_v9, %v1591_v27 }
 0x148   :  { %v1606_v10 = vmul.f32 0.5, %v1604_v21 }
 0x149   :  { %v1607_v47 = vmul.f32 0.5, %v1605_v15 }
 0x14b   :  { %v1610_v33 = vcombine.low %v1606_v10, %v1607_v47 }
 0x14d   :  { %v1617_v34 = vrot.slane %v1610_v33, %v1616_v8 }
 0x14f   :  { %v1624_v48 = vrot.slane %v1617_v34, %v1616_v8 }
 0x151   :  { %1630 = vst.msk [vmem:[#allocation8] sm:$0x3] %vm1628_vm14, %v1624_v48 }
 0x152   :  { %1797 = shalt.err (!%p1794_p0)
}
 0x153   :  { %s1798_s25 = scalar_lea.hbm %s2845_s3, 32 }
 0x154   :  { %p1799_p1 = scmp.ne.s32.totalorder %s2845_s3, %s1798_s25  ;;  %p1802_p2 = scmp.lt.u32.totalorder %s1798_s25, %s2845_s3 }
 0x156   :  { %p1804_p3 = pnand %p1802_p2, %p1799_p1 }
 0x158   :  { %1807 = shalt.err (!%p1804_p3)
}
 0x159   :  { %1640 = dma.vmem_to_hbm [thread:$0]  %s1638_s21, 32, %s2845_s3, [#allocation4]  }
 0x15a   :  { %1812 = dma.done.wait [#allocation4], 32  }
 0x15b   :  { %1813 = vsyncadd [#allocation4], 4294967264 }
 0x15c   :  { %1644 = vsyncpa [#allocation3], 1 }
 0x15d   :  { %1645 = vsyncpa [#allocation6], 1 }
 0x15e   :  { %1646 = vsyncpa [#allocation4], 1 }

</bundles_post_ra>
